<compile_context>
chip_gen: v5e
topology: v5e:2x2
jax: 0.10.0
libtpu: 0.0.40
codegen_flags: <defaults>
</compile_context>

<pallas_src>
import jax
import jax.numpy as jnp
import numpy as np
from jax.experimental import pallas as pl
from jax.experimental.pallas import tpu as pltpu


# --------------------------- fused model kernel -------------------------------
def _make_fused_lstm_fc_kernel(T, B, H, O, num_layers):
    """Kernel computing: stacked LSTM (num_layers) + Linear on h_{T-1}.

    Ref layout (all whole-array, VMEM resident, gridless):
      x2d_ref            : (T*B, D)   time-major input, row (t, b)
      wih0_ref           : (D, 4H)    layer-0 W_ih^T, gates (i,f,g,o) concatenated
      wrec_l, l=0..L-1   : (H, 8H) for l < L-1  -> [W_hh_l^T | W_ih_{l+1}^T]
                           (H, 4H) for l == L-1 ->  W_hh_l^T
      b_l,    l=0..L-1   : (1, 4H)    b_ih_l + b_hh_l
      fc_w_ref           : (H, O)
      fc_b_ref           : (1, O)
      out_ref            : (B, O)
    """
    H4 = 4 * H

    def kernel(x2d_ref, wih0_ref, *refs):
        out_ref = refs[-1]
        fc_b_ref = refs[-2]
        fc_w_ref = refs[-3]
        wrec_refs = refs[:num_layers]
        b_refs = refs[num_layers:2 * num_layers]

        def dot(a, b):
            return jnp.dot(a, b, preferred_element_type=jnp.float32)

        # Layer-0 input projection: ONE lane-dense (T*B, D) @ (D, 4H) matmul
        # covering every timestep and every gate, plus a (1, 4H) bias row
        # (VPU broadcasts along sublanes).  Entirely off the recurrent chain.
        gx_all = dot(x2d_ref[...], wih0_ref[...]) + b_refs[0][...]      # (T*B, 4H)
        gx = [gx_all[t * B:(t + 1) * B, :] for t in range(T)]           # T x (B, 4H)

        h = None
        for l in range(num_layers):
            # Per-layer weight scoping: only this layer's fused recurrent
            # matrix (which already carries layer l+1's input weights) and
            # layer l+1's bias are live while processing layer l.
            wrec = wrec_refs[l][...]                    # (H, 4H) or (H, 8H)
            last_layer = (l == num_layers - 1)
            if not last_layer:
                b_next = b_refs[l + 1][...]             # (1, 4H)

            gx_next = []
            c = None
            for t in range(T):
                if t == 0:
                    # h_{-1} = c_{-1} = 0: recurrent matmul and f-gate vanish.
                    z = gx[0]
                    i_g = jax.nn.sigmoid(z[:, 0:H])
                    g_g = jnp.tanh(z[:, 2 * H:3 * H])
                    o_g = jax.nn.sigmoid(z[:, 3 * H:H4])
                    c = i_g * g_g
                else:
                    # ONE fused (B,H) @ (H, 4H|8H) matmul per step: first 4H
                    # lanes -> this layer's recurrent gate terms for step t,
                    # trailing 4H lanes -> layer l+1's input projection of
                    # h_{t-1}.
                    z_rec = dot(h, wrec)
                    if not last_layer:
                        gx_next.append(z_rec[:, H4:] + b_next)   # gx_{l+1}[t-1]
                    z = gx[t] + z_rec[:, 0:H4]
                    i_g = jax.nn.sigmoid(z[:, 0:H])
                    f_g = jax.nn.sigmoid(z[:, H:2 * H])
                    g_g = jnp.tanh(z[:, 2 * H:3 * H])
                    o_g = jax.nn.sigmoid(z[:, 3 * H:H4])
                    c = f_g * c + i_g * g_g
                h = o_g * jnp.tanh(c)

            if not last_layer:
                # h_{T-1} has no further recurrent step to fuse with; emit its
                # next-layer projection with one small dot.
                gx_next.append(dot(h, wrec[:, H4:]) + b_next)
                gx = gx_next

        # Final FC on out[:, -1, :] == h_{T-1} of the top layer.
        # Single (B, O) writeback for the entire model.
        out_ref[...] = dot(h, fc_w_ref[...]) + fc_b_ref[...]

    return kernel


# ------------------------------ param packing ---------------------------------
def pack_params(raw_layers, fc_w, fc_b):
    """PyTorch-layout LSTM + FC params -> kernel layout.

    Returns (wih0_t, wrecs, biases, fc_w_t, fc_b_row) where
      wih0_t : (D, 4H)
      wrecs  : list of (H, 8H) (non-last layers: [W_hh^T | W_ih_next^T]) /
               (H, 4H) (last layer: W_hh^T)
      biases : list of (1, 4H) (b_ih + b_hh)
    """
    num_layers = len(raw_layers)
    wih0_t = jnp.transpose(raw_layers[0][0]).astype(jnp.float32)       # (D, 4H)
    wrecs, biases = [], []
    for l, (w_ih, w_hh, b_ih, b_hh) in enumerate(raw_layers):
        whh_t = jnp.transpose(w_hh)                                    # (H, 4H)
        if l + 1 < num_layers:
            next_wih_t = jnp.transpose(raw_layers[l + 1][0])           # (H, 4H)
            wrec = jnp.concatenate([whh_t, next_wih_t], axis=1)        # (H, 8H)
        else:
            wrec = whh_t                                               # (H, 4H)
        wrecs.append(wrec.astype(jnp.float32))
        biases.append((b_ih + b_hh).reshape(1, -1).astype(jnp.float32))
    fc_w_t = jnp.transpose(fc_w).astype(jnp.float32)                   # (H, O)
    fc_b_row = fc_b.reshape(1, -1).astype(jnp.float32)                 # (1, O)
    return wih0_t, wrecs, biases, fc_w_t, fc_b_row


# ------------------------------- full forward ---------------------------------
def lstm_model_forward(x, wih0_t, wrecs, biases, fc_w_t, fc_b_row):
    """x: (B, T, D) batch-first, like the PyTorch module. Returns (B, O)."""
    B, T, D = x.shape
    num_layers = len(wrecs)
    H = wrecs[0].shape[0]
    O = fc_w_t.shape[1]

    # Time-major, flattened over (t, b) so layer-0's projection is one matmul.
    x2d = jnp.transpose(x, (1, 0, 2)).reshape(T * B, D).astype(jnp.float32)

    kernel = _make_fused_lstm_fc_kernel(T, B, H, O, num_layers)
    n_inputs = 2 + 2 * num_layers + 2
    return pl.pallas_call(
        kernel,
        out_shape=jax.ShapeDtypeStruct((B, O), jnp.float32),
        in_specs=[pl.BlockSpec(memory_space=pltpu.MemorySpace.VMEM)
                  for _ in range(n_inputs)],
        out_specs=pl.BlockSpec(memory_space=pltpu.MemorySpace.VMEM),
    )(x2d, wih0_t, *wrecs, *biases, fc_w_t, fc_b_row)


# ------------------------------ pure-JAX reference ----------------------------
def lstm_model_reference(x, raw_layers, fc_w, fc_b):
    B, T, _ = x.shape
    seq = x
    for (w_ih, w_hh, b_ih, b_hh) in raw_layers:
        H = w_hh.shape[1]
        h = jnp.zeros((B, H), jnp.float32)
        c = jnp.zeros((B, H), jnp.float32)
        outs = []
        for t in range(T):
            gates = seq[:, t, :] @ w_ih.T + h @ w_hh.T + b_ih + b_hh
            i_g = jax.nn.sigmoid(gates[:, 0 * H:1 * H])
            f_g = jax.nn.sigmoid(gates[:, 1 * H:2 * H])
            g_g = jnp.tanh(gates[:, 2 * H:3 * H])
            o_g = jax.nn.sigmoid(gates[:, 3 * H:4 * H])
            c = f_g * c + i_g * g_g
            h = o_g * jnp.tanh(c)
            outs.append(h)
        seq = jnp.stack(outs, axis=1)
    return seq[:, -1, :] @ fc_w.T + fc_b


# ----------------------------------- main --------------------------------------
if __name__ == "__main__":
    batch, seq_len = 2, 8
    input_size, hidden_size = 4, 32
    num_stacked_layers = 2
    output_size = 4
    dropout_rate = 0.0  # inference semantics; inter-layer dropout omitted (see TODO)

    key = jax.random.PRNGKey(0)
    bound = 1.0 / np.sqrt(hidden_size)

    # PyTorch-style U(-1/sqrt(H), 1/sqrt(H)) init, raw PyTorch layouts.
    raw_layers = []
    in_dim = input_size
    for _ in range(num_stacked_layers):
        key, k1, k2, k3, k4 = jax.random.split(key, 5)
        w_ih = jax.random.uniform(k1, (4 * hidden_size, in_dim), jnp.float32, -bound, bound)
        w_hh = jax.random.uniform(k2, (4 * hidden_size, hidden_size), jnp.float32, -bound, bound)
        b_ih = jax.random.uniform(k3, (4 * hidden_size,), jnp.float32, -bound, bound)
        b_hh = jax.random.uniform(k4, (4 * hidden_size,), jnp.float32, -bound, bound)
        raw_layers.append((w_ih, w_hh, b_ih, b_hh))
        in_dim = hidden_size

    key, kf1, kf2, kx = jax.random.split(key, 4)
    fc_w = jax.random.uniform(kf1, (output_size, hidden_size), jnp.float32, -bound, bound)
    fc_b = jax.random.uniform(kf2, (output_size,), jnp.float32, -bound, bound)

    x = jax.random.normal(kx, (batch, seq_len, input_size), jnp.float32)

    # Glue: gate-concatenated, pre-transposed, layer-fused weights for the kernel.
    wih0_t, wrecs, biases, fc_w_t, fc_b_row = pack_params(raw_layers, fc_w, fc_b)

    fwd = jax.jit(lstm_model_forward)
    out = jax.block_until_ready(fwd(x, wih0_t, wrecs, biases, fc_w_t, fc_b_row))

    ref = lstm_model_reference(x, raw_layers, fc_w, fc_b)
    np.testing.assert_allclose(np.asarray(out), np.asarray(ref), rtol=1e-5, atol=1e-5)

    assert out.shape == (batch, output_size)
    print("KERNEL_OK")
</pallas_src>

<mosaic_0001>
module attributes {stable_mosaic.version = 11 : i64} {
  func.func @kernel(%arg0: memref<16x4xf32, #tpu.memory_space<vmem>>, %arg1: memref<4x128xf32, #tpu.memory_space<vmem>>, %arg2: memref<32x256xf32, #tpu.memory_space<vmem>>, %arg3: memref<32x128xf32, #tpu.memory_space<vmem>>, %arg4: memref<1x128xf32, #tpu.memory_space<vmem>>, %arg5: memref<1x128xf32, #tpu.memory_space<vmem>>, %arg6: memref<32x4xf32, #tpu.memory_space<vmem>>, %arg7: memref<1x4xf32, #tpu.memory_space<vmem>>, %arg8: memref<2x4xf32, #tpu.memory_space<vmem>>) attributes {dimension_semantics = [], scalar_prefetch = 0 : i64, scratch_operands = 0 : i64, tpu.core_type = #tpu.core_type<tc>} {
    %c0 = arith.constant 0 : index
    %c0_0 = arith.constant 0 : index
    %0 = vector.load %arg0[%c0, %c0_0] : memref<16x4xf32, #tpu.memory_space<vmem>>, vector<16x4xf32>
    %c0_1 = arith.constant 0 : index
    %c0_2 = arith.constant 0 : index
    %1 = vector.load %arg1[%c0_1, %c0_2] : memref<4x128xf32, #tpu.memory_space<vmem>>, vector<4x128xf32>
    %cst = arith.constant dense<0.000000e+00> : vector<16x128xf32>
    %2 = tpu.matmul %0, %1, %cst {dimension_numbers = #tpu.dot_dimension_numbers<[1], [0], [0], [1], [0, 0, 1, 1], [], []>} : vector<16x4xf32>, vector<4x128xf32>, vector<16x128xf32> -> vector<16x128xf32>
    %c0_3 = arith.constant 0 : index
    %c0_4 = arith.constant 0 : index
    %3 = vector.load %arg4[%c0_3, %c0_4] : memref<1x128xf32, #tpu.memory_space<vmem>>, vector<1x128xf32>
    %4 = vector.broadcast %3 : vector<1x128xf32> to vector<16x128xf32>
    %5 = arith.addf %2, %4 : vector<16x128xf32>
    %6 = vector.extract_strided_slice %5 {offsets = [0, 0], sizes = [2, 128], strides = [1, 1]} : vector<16x128xf32> to vector<2x128xf32>
    %7 = vector.extract_strided_slice %5 {offsets = [2, 0], sizes = [2, 128], strides = [1, 1]} : vector<16x128xf32> to vector<2x128xf32>
    %8 = vector.extract_strided_slice %5 {offsets = [4, 0], sizes = [2, 128], strides = [1, 1]} : vector<16x128xf32> to vector<2x128xf32>
    %9 = vector.extract_strided_slice %5 {offsets = [6, 0], sizes = [2, 128], strides = [1, 1]} : vector<16x128xf32> to vector<2x128xf32>
    %10 = vector.extract_strided_slice %5 {offsets = [8, 0], sizes = [2, 128], strides = [1, 1]} : vector<16x128xf32> to vector<2x128xf32>
    %11 = vector.extract_strided_slice %5 {offsets = [10, 0], sizes = [2, 128], strides = [1, 1]} : vector<16x128xf32> to vector<2x128xf32>
    %12 = vector.extract_strided_slice %5 {offsets = [12, 0], sizes = [2, 128], strides = [1, 1]} : vector<16x128xf32> to vector<2x128xf32>
    %13 = vector.extract_strided_slice %5 {offsets = [14, 0], sizes = [2, 128], strides = [1, 1]} : vector<16x128xf32> to vector<2x128xf32>
    %c0_5 = arith.constant 0 : index
    %c0_6 = arith.constant 0 : index
    %14 = vector.load %arg2[%c0_5, %c0_6] : memref<32x256xf32, #tpu.memory_space<vmem>>, vector<32x256xf32>
    %c0_7 = arith.constant 0 : index
    %c0_8 = arith.constant 0 : index
    %15 = vector.load %arg5[%c0_7, %c0_8] : memref<1x128xf32, #tpu.memory_space<vmem>>, vector<1x128xf32>
    %16 = vector.extract_strided_slice %6 {offsets = [0, 0], sizes = [2, 32], strides = [1, 1]} : vector<2x128xf32> to vector<2x32xf32>
    %17 = arith.negf %16 : vector<2x32xf32>
    %18 = math.exp %17 : vector<2x32xf32>
    %cst_9 = arith.constant 1.000000e+00 : f32
    %19 = vector.broadcast %cst_9 : f32 to vector<2x32xf32>
    %20 = arith.addf %19, %18 : vector<2x32xf32>
    %21 = arith.divf %19, %20 : vector<2x32xf32>
    %22 = vector.extract_strided_slice %6 {offsets = [0, 64], sizes = [2, 32], strides = [1, 1]} : vector<2x128xf32> to vector<2x32xf32>
    %23 = math.tanh %22 : vector<2x32xf32>
    %24 = vector.extract_strided_slice %6 {offsets = [0, 96], sizes = [2, 32], strides = [1, 1]} : vector<2x128xf32> to vector<2x32xf32>
    %25 = arith.negf %24 : vector<2x32xf32>
    %26 = math.exp %25 : vector<2x32xf32>
    %cst_10 = arith.constant 1.000000e+00 : f32
    %27 = vector.broadcast %cst_10 : f32 to vector<2x32xf32>
    %28 = arith.addf %27, %26 : vector<2x32xf32>
    %29 = arith.divf %27, %28 : vector<2x32xf32>
    %30 = arith.mulf %21, %23 : vector<2x32xf32>
    %31 = math.tanh %30 : vector<2x32xf32>
    %32 = arith.mulf %29, %31 : vector<2x32xf32>
    %cst_11 = arith.constant dense<0.000000e+00> : vector<2x256xf32>
    %33 = tpu.matmul %32, %14, %cst_11 {dimension_numbers = #tpu.dot_dimension_numbers<[1], [0], [0], [1], [0, 0, 1, 1], [], []>} : vector<2x32xf32>, vector<32x256xf32>, vector<2x256xf32> -> vector<2x256xf32>
    %34 = vector.extract_strided_slice %33 {offsets = [0, 128], sizes = [2, 128], strides = [1, 1]} : vector<2x256xf32> to vector<2x128xf32>
    %35 = vector.broadcast %15 : vector<1x128xf32> to vector<2x128xf32>
    %36 = arith.addf %34, %35 : vector<2x128xf32>
    %37 = vector.extract_strided_slice %33 {offsets = [0, 0], sizes = [2, 128], strides = [1, 1]} : vector<2x256xf32> to vector<2x128xf32>
    %38 = arith.addf %7, %37 : vector<2x128xf32>
    %39 = vector.extract_strided_slice %38 {offsets = [0, 0], sizes = [2, 32], strides = [1, 1]} : vector<2x128xf32> to vector<2x32xf32>
    %40 = arith.negf %39 : vector<2x32xf32>
    %41 = math.exp %40 : vector<2x32xf32>
    %cst_12 = arith.constant 1.000000e+00 : f32
    %42 = vector.broadcast %cst_12 : f32 to vector<2x32xf32>
    %43 = arith.addf %42, %41 : vector<2x32xf32>
    %44 = arith.divf %42, %43 : vector<2x32xf32>
    %45 = vector.extract_strided_slice %38 {offsets = [0, 32], sizes = [2, 32], strides = [1, 1]} : vector<2x128xf32> to vector<2x32xf32>
    %46 = arith.negf %45 : vector<2x32xf32>
    %47 = math.exp %46 : vector<2x32xf32>
    %cst_13 = arith.constant 1.000000e+00 : f32
    %48 = vector.broadcast %cst_13 : f32 to vector<2x32xf32>
    %49 = arith.addf %48, %47 : vector<2x32xf32>
    %50 = arith.divf %48, %49 : vector<2x32xf32>
    %51 = vector.extract_strided_slice %38 {offsets = [0, 64], sizes = [2, 32], strides = [1, 1]} : vector<2x128xf32> to vector<2x32xf32>
    %52 = math.tanh %51 : vector<2x32xf32>
    %53 = vector.extract_strided_slice %38 {offsets = [0, 96], sizes = [2, 32], strides = [1, 1]} : vector<2x128xf32> to vector<2x32xf32>
    %54 = arith.negf %53 : vector<2x32xf32>
    %55 = math.exp %54 : vector<2x32xf32>
    %cst_14 = arith.constant 1.000000e+00 : f32
    %56 = vector.broadcast %cst_14 : f32 to vector<2x32xf32>
    %57 = arith.addf %56, %55 : vector<2x32xf32>
    %58 = arith.divf %56, %57 : vector<2x32xf32>
    %59 = arith.mulf %50, %30 : vector<2x32xf32>
    %60 = arith.mulf %44, %52 : vector<2x32xf32>
    %61 = arith.addf %59, %60 : vector<2x32xf32>
    %62 = math.tanh %61 : vector<2x32xf32>
    %63 = arith.mulf %58, %62 : vector<2x32xf32>
    %cst_15 = arith.constant dense<0.000000e+00> : vector<2x256xf32>
    %64 = tpu.matmul %63, %14, %cst_15 {dimension_numbers = #tpu.dot_dimension_numbers<[1], [0], [0], [1], [0, 0, 1, 1], [], []>} : vector<2x32xf32>, vector<32x256xf32>, vector<2x256xf32> -> vector<2x256xf32>
    %65 = vector.extract_strided_slice %64 {offsets = [0, 128], sizes = [2, 128], strides = [1, 1]} : vector<2x256xf32> to vector<2x128xf32>
    %66 = vector.broadcast %15 : vector<1x128xf32> to vector<2x128xf32>
    %67 = arith.addf %65, %66 : vector<2x128xf32>
    %68 = vector.extract_strided_slice %64 {offsets = [0, 0], sizes = [2, 128], strides = [1, 1]} : vector<2x256xf32> to vector<2x128xf32>
    %69 = arith.addf %8, %68 : vector<2x128xf32>
    %70 = vector.extract_strided_slice %69 {offsets = [0, 0], sizes = [2, 32], strides = [1, 1]} : vector<2x128xf32> to vector<2x32xf32>
    %71 = arith.negf %70 : vector<2x32xf32>
    %72 = math.exp %71 : vector<2x32xf32>
    %cst_16 = arith.constant 1.000000e+00 : f32
    %73 = vector.broadcast %cst_16 : f32 to vector<2x32xf32>
    %74 = arith.addf %73, %72 : vector<2x32xf32>
    %75 = arith.divf %73, %74 : vector<2x32xf32>
    %76 = vector.extract_strided_slice %69 {offsets = [0, 32], sizes = [2, 32], strides = [1, 1]} : vector<2x128xf32> to vector<2x32xf32>
    %77 = arith.negf %76 : vector<2x32xf32>
    %78 = math.exp %77 : vector<2x32xf32>
    %cst_17 = arith.constant 1.000000e+00 : f32
    %79 = vector.broadcast %cst_17 : f32 to vector<2x32xf32>
    %80 = arith.addf %79, %78 : vector<2x32xf32>
    %81 = arith.divf %79, %80 : vector<2x32xf32>
    %82 = vector.extract_strided_slice %69 {offsets = [0, 64], sizes = [2, 32], strides = [1, 1]} : vector<2x128xf32> to vector<2x32xf32>
    %83 = math.tanh %82 : vector<2x32xf32>
    %84 = vector.extract_strided_slice %69 {offsets = [0, 96], sizes = [2, 32], strides = [1, 1]} : vector<2x128xf32> to vector<2x32xf32>
    %85 = arith.negf %84 : vector<2x32xf32>
    %86 = math.exp %85 : vector<2x32xf32>
    %cst_18 = arith.constant 1.000000e+00 : f32
    %87 = vector.broadcast %cst_18 : f32 to vector<2x32xf32>
    %88 = arith.addf %87, %86 : vector<2x32xf32>
    %89 = arith.divf %87, %88 : vector<2x32xf32>
    %90 = arith.mulf %81, %61 : vector<2x32xf32>
    %91 = arith.mulf %75, %83 : vector<2x32xf32>
    %92 = arith.addf %90, %91 : vector<2x32xf32>
    %93 = math.tanh %92 : vector<2x32xf32>
    %94 = arith.mulf %89, %93 : vector<2x32xf32>
    %cst_19 = arith.constant dense<0.000000e+00> : vector<2x256xf32>
    %95 = tpu.matmul %94, %14, %cst_19 {dimension_numbers = #tpu.dot_dimension_numbers<[1], [0], [0], [1], [0, 0, 1, 1], [], []>} : vector<2x32xf32>, vector<32x256xf32>, vector<2x256xf32> -> vector<2x256xf32>
    %96 = vector.extract_strided_slice %95 {offsets = [0, 128], sizes = [2, 128], strides = [1, 1]} : vector<2x256xf32> to vector<2x128xf32>
    %97 = vector.broadcast %15 : vector<1x128xf32> to vector<2x128xf32>
    %98 = arith.addf %96, %97 : vector<2x128xf32>
    %99 = vector.extract_strided_slice %95 {offsets = [0, 0], sizes = [2, 128], strides = [1, 1]} : vector<2x256xf32> to vector<2x128xf32>
    %100 = arith.addf %9, %99 : vector<2x128xf32>
    %101 = vector.extract_strided_slice %100 {offsets = [0, 0], sizes = [2, 32], strides = [1, 1]} : vector<2x128xf32> to vector<2x32xf32>
    %102 = arith.negf %101 : vector<2x32xf32>
    %103 = math.exp %102 : vector<2x32xf32>
    %cst_20 = arith.constant 1.000000e+00 : f32
    %104 = vector.broadcast %cst_20 : f32 to vector<2x32xf32>
    %105 = arith.addf %104, %103 : vector<2x32xf32>
    %106 = arith.divf %104, %105 : vector<2x32xf32>
    %107 = vector.extract_strided_slice %100 {offsets = [0, 32], sizes = [2, 32], strides = [1, 1]} : vector<2x128xf32> to vector<2x32xf32>
    %108 = arith.negf %107 : vector<2x32xf32>
    %109 = math.exp %108 : vector<2x32xf32>
    %cst_21 = arith.constant 1.000000e+00 : f32
    %110 = vector.broadcast %cst_21 : f32 to vector<2x32xf32>
    %111 = arith.addf %110, %109 : vector<2x32xf32>
    %112 = arith.divf %110, %111 : vector<2x32xf32>
    %113 = vector.extract_strided_slice %100 {offsets = [0, 64], sizes = [2, 32], strides = [1, 1]} : vector<2x128xf32> to vector<2x32xf32>
    %114 = math.tanh %113 : vector<2x32xf32>
    %115 = vector.extract_strided_slice %100 {offsets = [0, 96], sizes = [2, 32], strides = [1, 1]} : vector<2x128xf32> to vector<2x32xf32>
    %116 = arith.negf %115 : vector<2x32xf32>
    %117 = math.exp %116 : vector<2x32xf32>
    %cst_22 = arith.constant 1.000000e+00 : f32
    %118 = vector.broadcast %cst_22 : f32 to vector<2x32xf32>
    %119 = arith.addf %118, %117 : vector<2x32xf32>
    %120 = arith.divf %118, %119 : vector<2x32xf32>
    %121 = arith.mulf %112, %92 : vector<2x32xf32>
    %122 = arith.mulf %106, %114 : vector<2x32xf32>
    %123 = arith.addf %121, %122 : vector<2x32xf32>
    %124 = math.tanh %123 : vector<2x32xf32>
    %125 = arith.mulf %120, %124 : vector<2x32xf32>
    %cst_23 = arith.constant dense<0.000000e+00> : vector<2x256xf32>
    %126 = tpu.matmul %125, %14, %cst_23 {dimension_numbers = #tpu.dot_dimension_numbers<[1], [0], [0], [1], [0, 0, 1, 1], [], []>} : vector<2x32xf32>, vector<32x256xf32>, vector<2x256xf32> -> vector<2x256xf32>
    %127 = vector.extract_strided_slice %126 {offsets = [0, 128], sizes = [2, 128], strides = [1, 1]} : vector<2x256xf32> to vector<2x128xf32>
    %128 = vector.broadcast %15 : vector<1x128xf32> to vector<2x128xf32>
    %129 = arith.addf %127, %128 : vector<2x128xf32>
    %130 = vector.extract_strided_slice %126 {offsets = [0, 0], sizes = [2, 128], strides = [1, 1]} : vector<2x256xf32> to vector<2x128xf32>
    %131 = arith.addf %10, %130 : vector<2x128xf32>
    %132 = vector.extract_strided_slice %131 {offsets = [0, 0], sizes = [2, 32], strides = [1, 1]} : vector<2x128xf32> to vector<2x32xf32>
    %133 = arith.negf %132 : vector<2x32xf32>
    %134 = math.exp %133 : vector<2x32xf32>
    %cst_24 = arith.constant 1.000000e+00 : f32
    %135 = vector.broadcast %cst_24 : f32 to vector<2x32xf32>
    %136 = arith.addf %135, %134 : vector<2x32xf32>
    %137 = arith.divf %135, %136 : vector<2x32xf32>
    %138 = vector.extract_strided_slice %131 {offsets = [0, 32], sizes = [2, 32], strides = [1, 1]} : vector<2x128xf32> to vector<2x32xf32>
    %139 = arith.negf %138 : vector<2x32xf32>
    %140 = math.exp %139 : vector<2x32xf32>
    %cst_25 = arith.constant 1.000000e+00 : f32
    %141 = vector.broadcast %cst_25 : f32 to vector<2x32xf32>
    %142 = arith.addf %141, %140 : vector<2x32xf32>
    %143 = arith.divf %141, %142 : vector<2x32xf32>
    %144 = vector.extract_strided_slice %131 {offsets = [0, 64], sizes = [2, 32], strides = [1, 1]} : vector<2x128xf32> to vector<2x32xf32>
    %145 = math.tanh %144 : vector<2x32xf32>
    %146 = vector.extract_strided_slice %131 {offsets = [0, 96], sizes = [2, 32], strides = [1, 1]} : vector<2x128xf32> to vector<2x32xf32>
    %147 = arith.negf %146 : vector<2x32xf32>
    %148 = math.exp %147 : vector<2x32xf32>
    %cst_26 = arith.constant 1.000000e+00 : f32
    %149 = vector.broadcast %cst_26 : f32 to vector<2x32xf32>
    %150 = arith.addf %149, %148 : vector<2x32xf32>
    %151 = arith.divf %149, %150 : vector<2x32xf32>
    %152 = arith.mulf %143, %123 : vector<2x32xf32>
    %153 = arith.mulf %137, %145 : vector<2x32xf32>
    %154 = arith.addf %152, %153 : vector<2x32xf32>
    %155 = math.tanh %154 : vector<2x32xf32>
    %156 = arith.mulf %151, %155 : vector<2x32xf32>
    %cst_27 = arith.constant dense<0.000000e+00> : vector<2x256xf32>
    %157 = tpu.matmul %156, %14, %cst_27 {dimension_numbers = #tpu.dot_dimension_numbers<[1], [0], [0], [1], [0, 0, 1, 1], [], []>} : vector<2x32xf32>, vector<32x256xf32>, vector<2x256xf32> -> vector<2x256xf32>
    %158 = vector.extract_strided_slice %157 {offsets = [0, 128], sizes = [2, 128], strides = [1, 1]} : vector<2x256xf32> to vector<2x128xf32>
    %159 = vector.broadcast %15 : vector<1x128xf32> to vector<2x128xf32>
    %160 = arith.addf %158, %159 : vector<2x128xf32>
    %161 = vector.extract_strided_slice %157 {offsets = [0, 0], sizes = [2, 128], strides = [1, 1]} : vector<2x256xf32> to vector<2x128xf32>
    %162 = arith.addf %11, %161 : vector<2x128xf32>
    %163 = vector.extract_strided_slice %162 {offsets = [0, 0], sizes = [2, 32], strides = [1, 1]} : vector<2x128xf32> to vector<2x32xf32>
    %164 = arith.negf %163 : vector<2x32xf32>
    %165 = math.exp %164 : vector<2x32xf32>
    %cst_28 = arith.constant 1.000000e+00 : f32
    %166 = vector.broadcast %cst_28 : f32 to vector<2x32xf32>
    %167 = arith.addf %166, %165 : vector<2x32xf32>
    %168 = arith.divf %166, %167 : vector<2x32xf32>
    %169 = vector.extract_strided_slice %162 {offsets = [0, 32], sizes = [2, 32], strides = [1, 1]} : vector<2x128xf32> to vector<2x32xf32>
    %170 = arith.negf %169 : vector<2x32xf32>
    %171 = math.exp %170 : vector<2x32xf32>
    %cst_29 = arith.constant 1.000000e+00 : f32
    %172 = vector.broadcast %cst_29 : f32 to vector<2x32xf32>
    %173 = arith.addf %172, %171 : vector<2x32xf32>
    %174 = arith.divf %172, %173 : vector<2x32xf32>
    %175 = vector.extract_strided_slice %162 {offsets = [0, 64], sizes = [2, 32], strides = [1, 1]} : vector<2x128xf32> to vector<2x32xf32>
    %176 = math.tanh %175 : vector<2x32xf32>
    %177 = vector.extract_strided_slice %162 {offsets = [0, 96], sizes = [2, 32], strides = [1, 1]} : vector<2x128xf32> to vector<2x32xf32>
    %178 = arith.negf %177 : vector<2x32xf32>
    %179 = math.exp %178 : vector<2x32xf32>
    %cst_30 = arith.constant 1.000000e+00 : f32
    %180 = vector.broadcast %cst_30 : f32 to vector<2x32xf32>
    %181 = arith.addf %180, %179 : vector<2x32xf32>
    %182 = arith.divf %180, %181 : vector<2x32xf32>
    %183 = arith.mulf %174, %154 : vector<2x32xf32>
    %184 = arith.mulf %168, %176 : vector<2x32xf32>
    %185 = arith.addf %183, %184 : vector<2x32xf32>
    %186 = math.tanh %185 : vector<2x32xf32>
    %187 = arith.mulf %182, %186 : vector<2x32xf32>
    %cst_31 = arith.constant dense<0.000000e+00> : vector<2x256xf32>
    %188 = tpu.matmul %187, %14, %cst_31 {dimension_numbers = #tpu.dot_dimension_numbers<[1], [0], [0], [1], [0, 0, 1, 1], [], []>} : vector<2x32xf32>, vector<32x256xf32>, vector<2x256xf32> -> vector<2x256xf32>
    %189 = vector.extract_strided_slice %188 {offsets = [0, 128], sizes = [2, 128], strides = [1, 1]} : vector<2x256xf32> to vector<2x128xf32>
    %190 = vector.broadcast %15 : vector<1x128xf32> to vector<2x128xf32>
    %191 = arith.addf %189, %190 : vector<2x128xf32>
    %192 = vector.extract_strided_slice %188 {offsets = [0, 0], sizes = [2, 128], strides = [1, 1]} : vector<2x256xf32> to vector<2x128xf32>
    %193 = arith.addf %12, %192 : vector<2x128xf32>
    %194 = vector.extract_strided_slice %193 {offsets = [0, 0], sizes = [2, 32], strides = [1, 1]} : vector<2x128xf32> to vector<2x32xf32>
    %195 = arith.negf %194 : vector<2x32xf32>
    %196 = math.exp %195 : vector<2x32xf32>
    %cst_32 = arith.constant 1.000000e+00 : f32
    %197 = vector.broadcast %cst_32 : f32 to vector<2x32xf32>
    %198 = arith.addf %197, %196 : vector<2x32xf32>
    %199 = arith.divf %197, %198 : vector<2x32xf32>
    %200 = vector.extract_strided_slice %193 {offsets = [0, 32], sizes = [2, 32], strides = [1, 1]} : vector<2x128xf32> to vector<2x32xf32>
    %201 = arith.negf %200 : vector<2x32xf32>
    %202 = math.exp %201 : vector<2x32xf32>
    %cst_33 = arith.constant 1.000000e+00 : f32
    %203 = vector.broadcast %cst_33 : f32 to vector<2x32xf32>
    %204 = arith.addf %203, %202 : vector<2x32xf32>
    %205 = arith.divf %203, %204 : vector<2x32xf32>
    %206 = vector.extract_strided_slice %193 {offsets = [0, 64], sizes = [2, 32], strides = [1, 1]} : vector<2x128xf32> to vector<2x32xf32>
    %207 = math.tanh %206 : vector<2x32xf32>
    %208 = vector.extract_strided_slice %193 {offsets = [0, 96], sizes = [2, 32], strides = [1, 1]} : vector<2x128xf32> to vector<2x32xf32>
    %209 = arith.negf %208 : vector<2x32xf32>
    %210 = math.exp %209 : vector<2x32xf32>
    %cst_34 = arith.constant 1.000000e+00 : f32
    %211 = vector.broadcast %cst_34 : f32 to vector<2x32xf32>
    %212 = arith.addf %211, %210 : vector<2x32xf32>
    %213 = arith.divf %211, %212 : vector<2x32xf32>
    %214 = arith.mulf %205, %185 : vector<2x32xf32>
    %215 = arith.mulf %199, %207 : vector<2x32xf32>
    %216 = arith.addf %214, %215 : vector<2x32xf32>
    %217 = math.tanh %216 : vector<2x32xf32>
    %218 = arith.mulf %213, %217 : vector<2x32xf32>
    %cst_35 = arith.constant dense<0.000000e+00> : vector<2x256xf32>
    %219 = tpu.matmul %218, %14, %cst_35 {dimension_numbers = #tpu.dot_dimension_numbers<[1], [0], [0], [1], [0, 0, 1, 1], [], []>} : vector<2x32xf32>, vector<32x256xf32>, vector<2x256xf32> -> vector<2x256xf32>
    %220 = vector.extract_strided_slice %219 {offsets = [0, 128], sizes = [2, 128], strides = [1, 1]} : vector<2x256xf32> to vector<2x128xf32>
    %221 = vector.broadcast %15 : vector<1x128xf32> to vector<2x128xf32>
    %222 = arith.addf %220, %221 : vector<2x128xf32>
    %223 = vector.extract_strided_slice %219 {offsets = [0, 0], sizes = [2, 128], strides = [1, 1]} : vector<2x256xf32> to vector<2x128xf32>
    %224 = arith.addf %13, %223 : vector<2x128xf32>
    %225 = vector.extract_strided_slice %224 {offsets = [0, 0], sizes = [2, 32], strides = [1, 1]} : vector<2x128xf32> to vector<2x32xf32>
    %226 = arith.negf %225 : vector<2x32xf32>
    %227 = math.exp %226 : vector<2x32xf32>
    %cst_36 = arith.constant 1.000000e+00 : f32
    %228 = vector.broadcast %cst_36 : f32 to vector<2x32xf32>
    %229 = arith.addf %228, %227 : vector<2x32xf32>
    %230 = arith.divf %228, %229 : vector<2x32xf32>
    %231 = vector.extract_strided_slice %224 {offsets = [0, 32], sizes = [2, 32], strides = [1, 1]} : vector<2x128xf32> to vector<2x32xf32>
    %232 = arith.negf %231 : vector<2x32xf32>
    %233 = math.exp %232 : vector<2x32xf32>
    %cst_37 = arith.constant 1.000000e+00 : f32
    %234 = vector.broadcast %cst_37 : f32 to vector<2x32xf32>
    %235 = arith.addf %234, %233 : vector<2x32xf32>
    %236 = arith.divf %234, %235 : vector<2x32xf32>
    %237 = vector.extract_strided_slice %224 {offsets = [0, 64], sizes = [2, 32], strides = [1, 1]} : vector<2x128xf32> to vector<2x32xf32>
    %238 = math.tanh %237 : vector<2x32xf32>
    %239 = vector.extract_strided_slice %224 {offsets = [0, 96], sizes = [2, 32], strides = [1, 1]} : vector<2x128xf32> to vector<2x32xf32>
    %240 = arith.negf %239 : vector<2x32xf32>
    %241 = math.exp %240 : vector<2x32xf32>
    %cst_38 = arith.constant 1.000000e+00 : f32
    %242 = vector.broadcast %cst_38 : f32 to vector<2x32xf32>
    %243 = arith.addf %242, %241 : vector<2x32xf32>
    %244 = arith.divf %242, %243 : vector<2x32xf32>
    %245 = arith.mulf %236, %216 : vector<2x32xf32>
    %246 = arith.mulf %230, %238 : vector<2x32xf32>
    %247 = arith.addf %245, %246 : vector<2x32xf32>
    %248 = math.tanh %247 : vector<2x32xf32>
    %249 = arith.mulf %244, %248 : vector<2x32xf32>
    %250 = vector.extract_strided_slice %14 {offsets = [0, 128], sizes = [32, 128], strides = [1, 1]} : vector<32x256xf32> to vector<32x128xf32>
    %cst_39 = arith.constant dense<0.000000e+00> : vector<2x128xf32>
    %251 = tpu.matmul %249, %250, %cst_39 {dimension_numbers = #tpu.dot_dimension_numbers<[1], [0], [0], [1], [0, 0, 1, 1], [], []>} : vector<2x32xf32>, vector<32x128xf32>, vector<2x128xf32> -> vector<2x128xf32>
    %252 = vector.broadcast %15 : vector<1x128xf32> to vector<2x128xf32>
    %253 = arith.addf %251, %252 : vector<2x128xf32>
    %c0_40 = arith.constant 0 : index
    %c0_41 = arith.constant 0 : index
    %254 = vector.load %arg3[%c0_40, %c0_41] : memref<32x128xf32, #tpu.memory_space<vmem>>, vector<32x128xf32>
    %255 = vector.extract_strided_slice %36 {offsets = [0, 0], sizes = [2, 32], strides = [1, 1]} : vector<2x128xf32> to vector<2x32xf32>
    %256 = arith.negf %255 : vector<2x32xf32>
    %257 = math.exp %256 : vector<2x32xf32>
    %cst_42 = arith.constant 1.000000e+00 : f32
    %258 = vector.broadcast %cst_42 : f32 to vector<2x32xf32>
    %259 = arith.addf %258, %257 : vector<2x32xf32>
    %260 = arith.divf %258, %259 : vector<2x32xf32>
    %261 = vector.extract_strided_slice %36 {offsets = [0, 64], sizes = [2, 32], strides = [1, 1]} : vector<2x128xf32> to vector<2x32xf32>
    %262 = math.tanh %261 : vector<2x32xf32>
    %263 = vector.extract_strided_slice %36 {offsets = [0, 96], sizes = [2, 32], strides = [1, 1]} : vector<2x128xf32> to vector<2x32xf32>
    %264 = arith.negf %263 : vector<2x32xf32>
    %265 = math.exp %264 : vector<2x32xf32>
    %cst_43 = arith.constant 1.000000e+00 : f32
    %266 = vector.broadcast %cst_43 : f32 to vector<2x32xf32>
    %267 = arith.addf %266, %265 : vector<2x32xf32>
    %268 = arith.divf %266, %267 : vector<2x32xf32>
    %269 = arith.mulf %260, %262 : vector<2x32xf32>
    %270 = math.tanh %269 : vector<2x32xf32>
    %271 = arith.mulf %268, %270 : vector<2x32xf32>
    %cst_44 = arith.constant dense<0.000000e+00> : vector<2x128xf32>
    %272 = tpu.matmul %271, %254, %cst_44 {dimension_numbers = #tpu.dot_dimension_numbers<[1], [0], [0], [1], [0, 0, 1, 1], [], []>} : vector<2x32xf32>, vector<32x128xf32>, vector<2x128xf32> -> vector<2x128xf32>
    %273 = arith.addf %67, %272 : vector<2x128xf32>
    %274 = vector.extract_strided_slice %273 {offsets = [0, 0], sizes = [2, 32], strides = [1, 1]} : vector<2x128xf32> to vector<2x32xf32>
    %275 = arith.negf %274 : vector<2x32xf32>
    %276 = math.exp %275 : vector<2x32xf32>
    %cst_45 = arith.constant 1.000000e+00 : f32
    %277 = vector.broadcast %cst_45 : f32 to vector<2x32xf32>
    %278 = arith.addf %277, %276 : vector<2x32xf32>
    %279 = arith.divf %277, %278 : vector<2x32xf32>
    %280 = vector.extract_strided_slice %273 {offsets = [0, 32], sizes = [2, 32], strides = [1, 1]} : vector<2x128xf32> to vector<2x32xf32>
    %281 = arith.negf %280 : vector<2x32xf32>
    %282 = math.exp %281 : vector<2x32xf32>
    %cst_46 = arith.constant 1.000000e+00 : f32
    %283 = vector.broadcast %cst_46 : f32 to vector<2x32xf32>
    %284 = arith.addf %283, %282 : vector<2x32xf32>
    %285 = arith.divf %283, %284 : vector<2x32xf32>
    %286 = vector.extract_strided_slice %273 {offsets = [0, 64], sizes = [2, 32], strides = [1, 1]} : vector<2x128xf32> to vector<2x32xf32>
    %287 = math.tanh %286 : vector<2x32xf32>
    %288 = vector.extract_strided_slice %273 {offsets = [0, 96], sizes = [2, 32], strides = [1, 1]} : vector<2x128xf32> to vector<2x32xf32>
    %289 = arith.negf %288 : vector<2x32xf32>
    %290 = math.exp %289 : vector<2x32xf32>
    %cst_47 = arith.constant 1.000000e+00 : f32
    %291 = vector.broadcast %cst_47 : f32 to vector<2x32xf32>
    %292 = arith.addf %291, %290 : vector<2x32xf32>
    %293 = arith.divf %291, %292 : vector<2x32xf32>
    %294 = arith.mulf %285, %269 : vector<2x32xf32>
    %295 = arith.mulf %279, %287 : vector<2x32xf32>
    %296 = arith.addf %294, %295 : vector<2x32xf32>
    %297 = math.tanh %296 : vector<2x32xf32>
    %298 = arith.mulf %293, %297 : vector<2x32xf32>
    %cst_48 = arith.constant dense<0.000000e+00> : vector<2x128xf32>
    %299 = tpu.matmul %298, %254, %cst_48 {dimension_numbers = #tpu.dot_dimension_numbers<[1], [0], [0], [1], [0, 0, 1, 1], [], []>} : vector<2x32xf32>, vector<32x128xf32>, vector<2x128xf32> -> vector<2x128xf32>
    %300 = arith.addf %98, %299 : vector<2x128xf32>
    %301 = vector.extract_strided_slice %300 {offsets = [0, 0], sizes = [2, 32], strides = [1, 1]} : vector<2x128xf32> to vector<2x32xf32>
    %302 = arith.negf %301 : vector<2x32xf32>
    %303 = math.exp %302 : vector<2x32xf32>
    %cst_49 = arith.constant 1.000000e+00 : f32
    %304 = vector.broadcast %cst_49 : f32 to vector<2x32xf32>
    %305 = arith.addf %304, %303 : vector<2x32xf32>
    %306 = arith.divf %304, %305 : vector<2x32xf32>
    %307 = vector.extract_strided_slice %300 {offsets = [0, 32], sizes = [2, 32], strides = [1, 1]} : vector<2x128xf32> to vector<2x32xf32>
    %308 = arith.negf %307 : vector<2x32xf32>
    %309 = math.exp %308 : vector<2x32xf32>
    %cst_50 = arith.constant 1.000000e+00 : f32
    %310 = vector.broadcast %cst_50 : f32 to vector<2x32xf32>
    %311 = arith.addf %310, %309 : vector<2x32xf32>
    %312 = arith.divf %310, %311 : vector<2x32xf32>
    %313 = vector.extract_strided_slice %300 {offsets = [0, 64], sizes = [2, 32], strides = [1, 1]} : vector<2x128xf32> to vector<2x32xf32>
    %314 = math.tanh %313 : vector<2x32xf32>
    %315 = vector.extract_strided_slice %300 {offsets = [0, 96], sizes = [2, 32], strides = [1, 1]} : vector<2x128xf32> to vector<2x32xf32>
    %316 = arith.negf %315 : vector<2x32xf32>
    %317 = math.exp %316 : vector<2x32xf32>
    %cst_51 = arith.constant 1.000000e+00 : f32
    %318 = vector.broadcast %cst_51 : f32 to vector<2x32xf32>
    %319 = arith.addf %318, %317 : vector<2x32xf32>
    %320 = arith.divf %318, %319 : vector<2x32xf32>
    %321 = arith.mulf %312, %296 : vector<2x32xf32>
    %322 = arith.mulf %306, %314 : vector<2x32xf32>
    %323 = arith.addf %321, %322 : vector<2x32xf32>
    %324 = math.tanh %323 : vector<2x32xf32>
    %325 = arith.mulf %320, %324 : vector<2x32xf32>
    %cst_52 = arith.constant dense<0.000000e+00> : vector<2x128xf32>
    %326 = tpu.matmul %325, %254, %cst_52 {dimension_numbers = #tpu.dot_dimension_numbers<[1], [0], [0], [1], [0, 0, 1, 1], [], []>} : vector<2x32xf32>, vector<32x128xf32>, vector<2x128xf32> -> vector<2x128xf32>
    %327 = arith.addf %129, %326 : vector<2x128xf32>
    %328 = vector.extract_strided_slice %327 {offsets = [0, 0], sizes = [2, 32], strides = [1, 1]} : vector<2x128xf32> to vector<2x32xf32>
    %329 = arith.negf %328 : vector<2x32xf32>
    %330 = math.exp %329 : vector<2x32xf32>
    %cst_53 = arith.constant 1.000000e+00 : f32
    %331 = vector.broadcast %cst_53 : f32 to vector<2x32xf32>
    %332 = arith.addf %331, %330 : vector<2x32xf32>
    %333 = arith.divf %331, %332 : vector<2x32xf32>
    %334 = vector.extract_strided_slice %327 {offsets = [0, 32], sizes = [2, 32], strides = [1, 1]} : vector<2x128xf32> to vector<2x32xf32>
    %335 = arith.negf %334 : vector<2x32xf32>
    %336 = math.exp %335 : vector<2x32xf32>
    %cst_54 = arith.constant 1.000000e+00 : f32
    %337 = vector.broadcast %cst_54 : f32 to vector<2x32xf32>
    %338 = arith.addf %337, %336 : vector<2x32xf32>
    %339 = arith.divf %337, %338 : vector<2x32xf32>
    %340 = vector.extract_strided_slice %327 {offsets = [0, 64], sizes = [2, 32], strides = [1, 1]} : vector<2x128xf32> to vector<2x32xf32>
    %341 = math.tanh %340 : vector<2x32xf32>
    %342 = vector.extract_strided_slice %327 {offsets = [0, 96], sizes = [2, 32], strides = [1, 1]} : vector<2x128xf32> to vector<2x32xf32>
    %343 = arith.negf %342 : vector<2x32xf32>
    %344 = math.exp %343 : vector<2x32xf32>
    %cst_55 = arith.constant 1.000000e+00 : f32
    %345 = vector.broadcast %cst_55 : f32 to vector<2x32xf32>
    %346 = arith.addf %345, %344 : vector<2x32xf32>
    %347 = arith.divf %345, %346 : vector<2x32xf32>
    %348 = arith.mulf %339, %323 : vector<2x32xf32>
    %349 = arith.mulf %333, %341 : vector<2x32xf32>
    %350 = arith.addf %348, %349 : vector<2x32xf32>
    %351 = math.tanh %350 : vector<2x32xf32>
    %352 = arith.mulf %347, %351 : vector<2x32xf32>
    %cst_56 = arith.constant dense<0.000000e+00> : vector<2x128xf32>
    %353 = tpu.matmul %352, %254, %cst_56 {dimension_numbers = #tpu.dot_dimension_numbers<[1], [0], [0], [1], [0, 0, 1, 1], [], []>} : vector<2x32xf32>, vector<32x128xf32>, vector<2x128xf32> -> vector<2x128xf32>
    %354 = arith.addf %160, %353 : vector<2x128xf32>
    %355 = vector.extract_strided_slice %354 {offsets = [0, 0], sizes = [2, 32], strides = [1, 1]} : vector<2x128xf32> to vector<2x32xf32>
    %356 = arith.negf %355 : vector<2x32xf32>
    %357 = math.exp %356 : vector<2x32xf32>
    %cst_57 = arith.constant 1.000000e+00 : f32
    %358 = vector.broadcast %cst_57 : f32 to vector<2x32xf32>
    %359 = arith.addf %358, %357 : vector<2x32xf32>
    %360 = arith.divf %358, %359 : vector<2x32xf32>
    %361 = vector.extract_strided_slice %354 {offsets = [0, 32], sizes = [2, 32], strides = [1, 1]} : vector<2x128xf32> to vector<2x32xf32>
    %362 = arith.negf %361 : vector<2x32xf32>
    %363 = math.exp %362 : vector<2x32xf32>
    %cst_58 = arith.constant 1.000000e+00 : f32
    %364 = vector.broadcast %cst_58 : f32 to vector<2x32xf32>
    %365 = arith.addf %364, %363 : vector<2x32xf32>
    %366 = arith.divf %364, %365 : vector<2x32xf32>
    %367 = vector.extract_strided_slice %354 {offsets = [0, 64], sizes = [2, 32], strides = [1, 1]} : vector<2x128xf32> to vector<2x32xf32>
    %368 = math.tanh %367 : vector<2x32xf32>
    %369 = vector.extract_strided_slice %354 {offsets = [0, 96], sizes = [2, 32], strides = [1, 1]} : vector<2x128xf32> to vector<2x32xf32>
    %370 = arith.negf %369 : vector<2x32xf32>
    %371 = math.exp %370 : vector<2x32xf32>
    %cst_59 = arith.constant 1.000000e+00 : f32
    %372 = vector.broadcast %cst_59 : f32 to vector<2x32xf32>
    %373 = arith.addf %372, %371 : vector<2x32xf32>
    %374 = arith.divf %372, %373 : vector<2x32xf32>
    %375 = arith.mulf %366, %350 : vector<2x32xf32>
    %376 = arith.mulf %360, %368 : vector<2x32xf32>
    %377 = arith.addf %375, %376 : vector<2x32xf32>
    %378 = math.tanh %377 : vector<2x32xf32>
    %379 = arith.mulf %374, %378 : vector<2x32xf32>
    %cst_60 = arith.constant dense<0.000000e+00> : vector<2x128xf32>
    %380 = tpu.matmul %379, %254, %cst_60 {dimension_numbers = #tpu.dot_dimension_numbers<[1], [0], [0], [1], [0, 0, 1, 1], [], []>} : vector<2x32xf32>, vector<32x128xf32>, vector<2x128xf32> -> vector<2x128xf32>
    %381 = arith.addf %191, %380 : vector<2x128xf32>
    %382 = vector.extract_strided_slice %381 {offsets = [0, 0], sizes = [2, 32], strides = [1, 1]} : vector<2x128xf32> to vector<2x32xf32>
    %383 = arith.negf %382 : vector<2x32xf32>
    %384 = math.exp %383 : vector<2x32xf32>
    %cst_61 = arith.constant 1.000000e+00 : f32
    %385 = vector.broadcast %cst_61 : f32 to vector<2x32xf32>
    %386 = arith.addf %385, %384 : vector<2x32xf32>
    %387 = arith.divf %385, %386 : vector<2x32xf32>
    %388 = vector.extract_strided_slice %381 {offsets = [0, 32], sizes = [2, 32], strides = [1, 1]} : vector<2x128xf32> to vector<2x32xf32>
    %389 = arith.negf %388 : vector<2x32xf32>
    %390 = math.exp %389 : vector<2x32xf32>
    %cst_62 = arith.constant 1.000000e+00 : f32
    %391 = vector.broadcast %cst_62 : f32 to vector<2x32xf32>
    %392 = arith.addf %391, %390 : vector<2x32xf32>
    %393 = arith.divf %391, %392 : vector<2x32xf32>
    %394 = vector.extract_strided_slice %381 {offsets = [0, 64], sizes = [2, 32], strides = [1, 1]} : vector<2x128xf32> to vector<2x32xf32>
    %395 = math.tanh %394 : vector<2x32xf32>
    %396 = vector.extract_strided_slice %381 {offsets = [0, 96], sizes = [2, 32], strides = [1, 1]} : vector<2x128xf32> to vector<2x32xf32>
    %397 = arith.negf %396 : vector<2x32xf32>
    %398 = math.exp %397 : vector<2x32xf32>
    %cst_63 = arith.constant 1.000000e+00 : f32
    %399 = vector.broadcast %cst_63 : f32 to vector<2x32xf32>
    %400 = arith.addf %399, %398 : vector<2x32xf32>
    %401 = arith.divf %399, %400 : vector<2x32xf32>
    %402 = arith.mulf %393, %377 : vector<2x32xf32>
    %403 = arith.mulf %387, %395 : vector<2x32xf32>
    %404 = arith.addf %402, %403 : vector<2x32xf32>
    %405 = math.tanh %404 : vector<2x32xf32>
    %406 = arith.mulf %401, %405 : vector<2x32xf32>
    %cst_64 = arith.constant dense<0.000000e+00> : vector<2x128xf32>
    %407 = tpu.matmul %406, %254, %cst_64 {dimension_numbers = #tpu.dot_dimension_numbers<[1], [0], [0], [1], [0, 0, 1, 1], [], []>} : vector<2x32xf32>, vector<32x128xf32>, vector<2x128xf32> -> vector<2x128xf32>
    %408 = arith.addf %222, %407 : vector<2x128xf32>
    %409 = vector.extract_strided_slice %408 {offsets = [0, 0], sizes = [2, 32], strides = [1, 1]} : vector<2x128xf32> to vector<2x32xf32>
    %410 = arith.negf %409 : vector<2x32xf32>
    %411 = math.exp %410 : vector<2x32xf32>
    %cst_65 = arith.constant 1.000000e+00 : f32
    %412 = vector.broadcast %cst_65 : f32 to vector<2x32xf32>
    %413 = arith.addf %412, %411 : vector<2x32xf32>
    %414 = arith.divf %412, %413 : vector<2x32xf32>
    %415 = vector.extract_strided_slice %408 {offsets = [0, 32], sizes = [2, 32], strides = [1, 1]} : vector<2x128xf32> to vector<2x32xf32>
    %416 = arith.negf %415 : vector<2x32xf32>
    %417 = math.exp %416 : vector<2x32xf32>
    %cst_66 = arith.constant 1.000000e+00 : f32
    %418 = vector.broadcast %cst_66 : f32 to vector<2x32xf32>
    %419 = arith.addf %418, %417 : vector<2x32xf32>
    %420 = arith.divf %418, %419 : vector<2x32xf32>
    %421 = vector.extract_strided_slice %408 {offsets = [0, 64], sizes = [2, 32], strides = [1, 1]} : vector<2x128xf32> to vector<2x32xf32>
    %422 = math.tanh %421 : vector<2x32xf32>
    %423 = vector.extract_strided_slice %408 {offsets = [0, 96], sizes = [2, 32], strides = [1, 1]} : vector<2x128xf32> to vector<2x32xf32>
    %424 = arith.negf %423 : vector<2x32xf32>
    %425 = math.exp %424 : vector<2x32xf32>
    %cst_67 = arith.constant 1.000000e+00 : f32
    %426 = vector.broadcast %cst_67 : f32 to vector<2x32xf32>
    %427 = arith.addf %426, %425 : vector<2x32xf32>
    %428 = arith.divf %426, %427 : vector<2x32xf32>
    %429 = arith.mulf %420, %404 : vector<2x32xf32>
    %430 = arith.mulf %414, %422 : vector<2x32xf32>
    %431 = arith.addf %429, %430 : vector<2x32xf32>
    %432 = math.tanh %431 : vector<2x32xf32>
    %433 = arith.mulf %428, %432 : vector<2x32xf32>
    %cst_68 = arith.constant dense<0.000000e+00> : vector<2x128xf32>
    %434 = tpu.matmul %433, %254, %cst_68 {dimension_numbers = #tpu.dot_dimension_numbers<[1], [0], [0], [1], [0, 0, 1, 1], [], []>} : vector<2x32xf32>, vector<32x128xf32>, vector<2x128xf32> -> vector<2x128xf32>
    %435 = arith.addf %253, %434 : vector<2x128xf32>
    %436 = vector.extract_strided_slice %435 {offsets = [0, 0], sizes = [2, 32], strides = [1, 1]} : vector<2x128xf32> to vector<2x32xf32>
    %437 = arith.negf %436 : vector<2x32xf32>
    %438 = math.exp %437 : vector<2x32xf32>
    %cst_69 = arith.constant 1.000000e+00 : f32
    %439 = vector.broadcast %cst_69 : f32 to vector<2x32xf32>
    %440 = arith.addf %439, %438 : vector<2x32xf32>
    %441 = arith.divf %439, %440 : vector<2x32xf32>
    %442 = vector.extract_strided_slice %435 {offsets = [0, 32], sizes = [2, 32], strides = [1, 1]} : vector<2x128xf32> to vector<2x32xf32>
    %443 = arith.negf %442 : vector<2x32xf32>
    %444 = math.exp %443 : vector<2x32xf32>
    %cst_70 = arith.constant 1.000000e+00 : f32
    %445 = vector.broadcast %cst_70 : f32 to vector<2x32xf32>
    %446 = arith.addf %445, %444 : vector<2x32xf32>
    %447 = arith.divf %445, %446 : vector<2x32xf32>
    %448 = vector.extract_strided_slice %435 {offsets = [0, 64], sizes = [2, 32], strides = [1, 1]} : vector<2x128xf32> to vector<2x32xf32>
    %449 = math.tanh %448 : vector<2x32xf32>
    %450 = vector.extract_strided_slice %435 {offsets = [0, 96], sizes = [2, 32], strides = [1, 1]} : vector<2x128xf32> to vector<2x32xf32>
    %451 = arith.negf %450 : vector<2x32xf32>
    %452 = math.exp %451 : vector<2x32xf32>
    %cst_71 = arith.constant 1.000000e+00 : f32
    %453 = vector.broadcast %cst_71 : f32 to vector<2x32xf32>
    %454 = arith.addf %453, %452 : vector<2x32xf32>
    %455 = arith.divf %453, %454 : vector<2x32xf32>
    %456 = arith.mulf %447, %431 : vector<2x32xf32>
    %457 = arith.mulf %441, %449 : vector<2x32xf32>
    %458 = arith.addf %456, %457 : vector<2x32xf32>
    %459 = math.tanh %458 : vector<2x32xf32>
    %460 = arith.mulf %455, %459 : vector<2x32xf32>
    %c0_72 = arith.constant 0 : index
    %c0_73 = arith.constant 0 : index
    %461 = vector.load %arg6[%c0_72, %c0_73] : memref<32x4xf32, #tpu.memory_space<vmem>>, vector<32x4xf32>
    %cst_74 = arith.constant dense<0.000000e+00> : vector<2x4xf32>
    %462 = tpu.matmul %460, %461, %cst_74 {dimension_numbers = #tpu.dot_dimension_numbers<[1], [0], [0], [1], [0, 0, 1, 1], [], []>} : vector<2x32xf32>, vector<32x4xf32>, vector<2x4xf32> -> vector<2x4xf32>
    %c0_75 = arith.constant 0 : index
    %c0_76 = arith.constant 0 : index
    %463 = vector.load %arg7[%c0_75, %c0_76] : memref<1x4xf32, #tpu.memory_space<vmem>>, vector<1x4xf32>
    %464 = vector.broadcast %463 : vector<1x4xf32> to vector<2x4xf32>
    %465 = arith.addf %462, %464 : vector<2x4xf32>
    %c0_77 = arith.constant 0 : index
    %c0_78 = arith.constant 0 : index
    %466 = vector.load %arg8[%c0_77, %c0_78] : memref<2x4xf32, #tpu.memory_space<vmem>>, vector<2x4xf32>
    tpu.vector_store %arg8[%c0_77, %c0_78], %465 {strides = array<i32>} : memref<2x4xf32, #tpu.memory_space<vmem>>, vector<2x4xf32>,
    return
  }
}

</mosaic_0001>

<bundles_post_ra>
// kernel: lstm_model_forward.1
= control target key start
LH: loop header
LB: loop body
LE: loop exit
PB: predicated region body
PF: predicated region fallthrough
CT: control target
= control target key end

     0   :  { %13 = vsyncpa [#allocation3], 0  ;;  %s1918_s0 = inlined_call_operand.vmem [shape: f32[16,4], index: 0, kind: input, shape index: {}]   ;;  %s1919_s1 = inlined_call_operand.vmem [shape: f32[4,128], index: 1, kind: input, shape index: {}]   ;;  %s1920_s2 = inlined_call_operand.hbm [shape: f32[32,256], index: 2, kind: input, shape index: {}]   ;;  %s1921_s3 = inlined_call_operand.vmem [shape: f32[32,128], index: 3, kind: input, shape index: {}]   ;;  %s1922_s4 = inlined_call_operand.vmem [shape: f32[1,128], index: 4, kind: input, shape index: {}]   ;;  %s1923_s5 = inlined_call_operand.vmem [shape: f32[1,128], index: 5, kind: input, shape index: {}]   ;;  %s1924_s6 = inlined_call_operand.vmem [shape: f32[32,4], index: 6, kind: input, shape index: {}]   ;;  %s1925_s7 = inlined_call_operand.vmem [shape: f32[1,4], index: 7, kind: input, shape index: {}]   ;;  %s1926_s8 = inlined_call_operand.hbm [shape: f32[2,4], index: 8, kind: output, shape index: {}]  }
   0x1   :  { %14 = vsyncpa [#allocation4], 0  ;;  %s23_s29 = sshll.u32 %s1920_s2, 4  ;;  %s1555_s30 = smov [#allocation2]   ;;  %s24_s29 = int_to_ptr.hbm [resolvable:$true] %s23_s29 }
   0x2   :  { %s25_s9 = sshll.u32 %s1555_s30, 4  ;;  %s1556_s10 = smov 256   ;;  %s26_s9 = int_to_ptr.vmem [resolvable:$true] %s25_s9 }
   0x3   :  { %s1557_s11 = smov 16  }
   0x4   :  { %31 = dma.hbm_to_vmem [thread:$0]  %s24_s29, 1024, %s26_s9, [#allocation3], %s1556_s10, %s1556_s10, %s1557_s11  }
   0x5   :  { %1551 = dma.done.wait [#allocation3], 1024  }
   0x6   :  { %1552 = vsyncadd [#allocation3], 4294966272  ;;  %vm60_vm0 = vcmask 1043456   ;;  %vm53_vm1 = vcmask 31744   ;;  %v48_v0 = vld [vmem:[%s1919_s1] sm:$0xf] }
   0x7   :  { %v46_v1 = vld [vmem:[%s1918_s0] sm:$0xff]  ;;  %1323 = vmatpush.msk.msra.mxu0 %vm60_vm0, %v48_v0  ;;  %s1558_s1 = smov 64   ;;  %s1560_s17 = smov 96   ;;  %v1630_v23 = vld [vmem:[#allocation2 + $0x30] sm:$0xff]  ;;  %v1632_v24 = vld [vmem:[#allocation2 + $0x38] sm:$0xff]  ;;  %vm130_vm6 = vcmask 261120  }
   0x8   :  { %1324 = vmatmul.msk.f32.vlgmr.msra.gmra.mxu0 %vm53_vm1, %v46_v1  ;;  %v1620_v2 = vld [vmem:[%s1922_s4] ss:$0 sm:$0xff]  ;;  %s1559_s4 = smov 32   ;;  %145 = vmatpush.msra.mxu1 %v1630_v23  ;;  %v1638_v26 = vld [vmem:[#allocation2 + $0x28] sm:$0xff]  ;;  %v1640_v27 = vld [vmem:[#allocation2 + $0x10] sm:$0xff]  ;;  %s1561_s15 = smov [#allocation5]  }
   0x9   :  { %v1634_v25 = vld [vmem:[#allocation2 + $0x20] sm:$0xff]  ;;  %165 = vmatpush.msra.mxu2 %v1632_v24  ;;  %v1642_v28 = vld [vmem:[#allocation2 + $0x18] sm:$0xff]  ;;  %241 = vmatpush.msra.mxu3 %v1630_v23  ;;  %v1650_v30 = vld [vmem:[#allocation2 + $0x8] sm:$0xff]  ;;  %s1311_s2 = sshll.u32 %s1561_s15, 4  ;;  %s1312_s2 = int_to_ptr.vmem [resolvable:$true] %s1311_s2 }
   0xa   :  { %423 = vmatpush.msrb.mxu0 %v1630_v23  ;;  %146 = vmatpush.msra.mxu1 %v1634_v25  ;;  %v1648_v29 = vld [vmem:[#allocation2] sm:$0xff] }
   0xb   :  { %166 = vmatpush.msra.mxu2 %v1638_v26  ;;  %242 = vmatpush.msra.mxu3 %v1634_v25 }
   0xc   :  { %424 = vmatpush.msrb.mxu0 %v1634_v25  ;;  %147 = vmatpush.msra.mxu1 %v1640_v27 }
   0xd   :  { %167 = vmatpush.msra.mxu2 %v1642_v28  ;;  %243 = vmatpush.msra.mxu3 %v1640_v27 }
   0xe   :  { %425 = vmatpush.msrb.mxu0 %v1640_v27  ;;  %148 = vmatpush.msra.mxu1 %v1648_v29 }
   0xf   :  { %168 = vmatpush.msra.mxu2 %v1650_v30  ;;  %244 = vmatpush.msra.mxu3 %v1648_v29 }
  0x10   :  { %261 = vmatpush.msrb.mxu1 %v1632_v24  ;;  %426 = vmatpush.msrb.mxu0 %v1648_v29 }
  0x11   :  { %332 = vmatpush.msrb.mxu2 %v1630_v23  ;;  %352 = vmatpush.msrb.mxu3 %v1632_v24 }
  0x12   :  { %262 = vmatpush.msrb.mxu1 %v1638_v26  ;;  %601 = vmatpush.msra.mxu0 %v1630_v23 }
  0x13   :  { %333 = vmatpush.msrb.mxu2 %v1634_v25  ;;  %353 = vmatpush.msrb.mxu3 %v1638_v26 }
  0x14   :  { %263 = vmatpush.msrb.mxu1 %v1642_v28  ;;  %602 = vmatpush.msra.mxu0 %v1634_v25 }
  0x15   :  { %334 = vmatpush.msrb.mxu2 %v1640_v27  ;;  %354 = vmatpush.msrb.mxu3 %v1642_v28 }
  0x16   :  { %264 = vmatpush.msrb.mxu1 %v1650_v30  ;;  %603 = vmatpush.msra.mxu0 %v1640_v27 }
  0x17   :  { %335 = vmatpush.msrb.mxu2 %v1648_v29  ;;  %355 = vmatpush.msrb.mxu3 %v1650_v30 }
  0x18   :  { %604 = vmatpush.msra.mxu0 %v1648_v29 }
  0x85   :  { %v81_v3 = vpop.f32.mrf.mxu0 }
  0x86   :  { %v1623_v4 = vadd.f32 %v1620_v2, %v81_v3 }
  0x88   :  { %1375 = vtanh.f32 %v1623_v4  ;;  %v1326_v6 = vmul.f32 -1.442695, %v1623_v4 }
  0x8a   :  { %1377 = vpow2.f32 %v1326_v6 }
  0x8e   :  { %v1376_v5 = vpop.eup %1375 }
  0x8f   :  { %117 = vrot.lane.b32.xlu0 %v1376_v5, %s1558_s1 }
  0x90   :  { %v1378_v7 = vpop.eup %1377 }
  0x91   :  { %v99_v8 = vadd.f32 1.0, %v1378_v7 }
  0x93   :  { %1379 = vrcp.f32 %v99_v8  ;;  %v111_v14 = vand.u32 2147483648, %v99_v8  ;;  %vm105_vm3 = vweird.f32 %v99_v8  ;;  %v109_v15 = vand.u32 2147483647, %v99_v8 }
  0x95   :  { %v112_v17 = vor.u32 1.1754944e-38, %v111_v14  ;;  %vm110_vm5 = vcmp.eq.f32.partialorder %v109_v15, 8.507059e+37 }
  0x99   :  { %v1380_v9 = vpop.eup %1379 }
  0x9a   :  { %v101_v10 = vmul.f32 %v1380_v9, %v99_v8  ;;  %vm106_vm2 = vweird.f32 %v1380_v9 }
  0x9b   :  { %vm107_vm4 = vmor %vm105_vm3, %vm106_vm2 }
  0x9c   :  { %v102_v11 = vsub.f32 1.0, %v101_v10 }
  0x9e   :  { %v103_v12 = vmul.f32 %v1380_v9, %v102_v11 }
  0xa0   :  { %v104_v13 = vadd.f32 %v1380_v9, %v103_v12 }
  0xa2   :  { %v108_v16 = vsel %vm107_vm4, %v1380_v9, %v104_v13 }
  0xa3   :  { %v113_v19 = vsel %vm110_vm5, %v112_v17, %v108_v16 }
 0x101   :  { %v118_v18 = vpop.permute.xlu0 %117 }
 0x102   :  { %v120_v20 = vmul.f32 %v118_v18, %v113_v19 }
 0x104   :  { %1381 = vtanh.f32 %v120_v20  ;;  %v202_v21 = vrot.slane %v120_v20, 6 }
 0x106   :  { %203 = vrot.lane.b32.xlu2 %v202_v21, %s1559_s4 }
 0x10a   :  { %v1382_v22 = vpop.eup %1381 }
 0x10b   :  { %123 = vrot.lane.b32.xlu0 %v1382_v22, %s1560_s17 }
 0x160   :  { %v204_v53 = vpop.permute.xlu2 %203 }
 0x17d   :  { %v124_v31 = vpop.permute.xlu0 %123 }
 0x17e   :  { %v126_v32 = vmul.f32 %v124_v31, %v113_v19 }
 0x180   :  { %128 = vrot.lane.b32.xlu1 %v126_v32, %s1559_s4 }
 0x1f2   :  { %v129_v33 = vpop.permute.xlu1 %128 }
 0x1f3   :  { %1327 = vmatmul.msk.f32.vlgmr.msra.gmra.mxu1 %vm130_vm6, %v129_v33  ;;  %1328 = vmatmul.msk.f32.vlgmr.msra.gmra.mxu2 %vm130_vm6, %v129_v33 }
 0x1f4   :  { %443 = vmatpush.msra.mxu1 %v1632_v24  ;;  %510 = vmatpush.msra.mxu2 %v1630_v23 }
 0x1f6   :  { %444 = vmatpush.msra.mxu1 %v1638_v26  ;;  %511 = vmatpush.msra.mxu2 %v1634_v25 }
 0x1f8   :  { %445 = vmatpush.msra.mxu1 %v1642_v28  ;;  %512 = vmatpush.msra.mxu2 %v1640_v27 }
 0x1fa   :  { %446 = vmatpush.msra.mxu1 %v1650_v30  ;;  %513 = vmatpush.msra.mxu2 %v1648_v29 }
 0x270   :  { %v150_v34 = vpop.f32.mrf.mxu1 }
 0x271   :  { %v178_v35 = vrot.slane %v150_v34, 6 }
 0x273   :  { %v180_v36 = vadd.f32 %v178_v35, %v1623_v4 }
 0x275   :  { %1383 = vtanh.f32 %v180_v36  ;;  %v1329_v38 = vmul.f32 -1.442695, %v180_v36 }
 0x276   :  { %v1719_v36 = vpop.f32.mrf.mxu2 }
 0x277   :  { %1385 = vpow2.f32 %v1329_v38 }
 0x27b   :  { %v1384_v37 = vpop.eup %1383 }
 0x27c   :  { %208 = vrot.lane.b32.xlu1 %v1384_v37, %s1558_s1 }
 0x27d   :  { %v1386_v39 = vpop.eup %1385 }
 0x27e   :  { %v184_v40 = vadd.f32 1.0, %v1386_v39 }
 0x280   :  { %1387 = vrcp.f32 %v184_v40  ;;  %v196_v46 = vand.u32 2147483648, %v184_v40  ;;  %vm190_vm8 = vweird.f32 %v184_v40  ;;  %v194_v47 = vand.u32 2147483647, %v184_v40 }
 0x282   :  { %v197_v49 = vor.u32 1.1754944e-38, %v196_v46  ;;  %vm195_vm10 = vcmp.eq.f32.partialorder %v194_v47, 8.507059e+37 }
 0x286   :  { %v1388_v41 = vpop.eup %1387 }
 0x287   :  { %v186_v42 = vmul.f32 %v1388_v41, %v184_v40  ;;  %vm191_vm7 = vweird.f32 %v1388_v41 }
 0x288   :  { %vm192_vm9 = vmor %vm190_vm8, %vm191_vm7 }
 0x289   :  { %v187_v43 = vsub.f32 1.0, %v186_v42 }
 0x28b   :  { %v188_v44 = vmul.f32 %v1388_v41, %v187_v43 }
 0x28d   :  { %v189_v45 = vadd.f32 %v1388_v41, %v188_v44 }
 0x28f   :  { %v193_v48 = vsel %vm192_vm9, %v1388_v41, %v189_v45 }
 0x290   :  { %v198_v51 = vsel %vm195_vm10, %v197_v49, %v193_v48 }
 0x291   :  { %v206_v54 = vmul.f32 %v204_v53, %v198_v51 }
 0x2ee   :  { %v209_v50 = vpop.permute.xlu1 %208 }
 0x2ef   :  { %v211_v52 = vmul.f32 %v209_v50, %v198_v51 }
 0x2f1   :  { %213 = vrot.lane.b32.xlu2 %v211_v52, %s1559_s4 }
 0x34b   :  { %v214_v55 = vpop.permute.xlu2 %213 }
 0x34c   :  { %v216_v56 = vadd.f32 %v214_v55, %v206_v54 }
 0x34e   :  { %1389 = vtanh.f32 %v216_v56  ;;  %v295_v19 = vrot.slane %v216_v56, 6  ;;  %v47_v56 = vld [vmem:[%s1918_s0 + $0x8] sm:$0xff] }
 0x34f   :  { %1325 = vmatmul.msk.f32.gmra.mxu0 %vm53_vm1, %v47_v56 }
 0x354   :  { %v1390_v57 = vpop.eup %1389 }
 0x355   :  { %219 = vrot.lane.b32.xlu0 %v1390_v57, %s1558_s1 }
 0x3c7   :  { %v220_v58 = vpop.permute.xlu0 %219 }
 0x3c8   :  { %v222_v59 = vmul.f32 %v220_v58, %v198_v51 }
 0x3ca   :  { %v224_v60 = vrot.slane %v222_v59, 2 }
 0x3cc   :  { %225 = vrot.lane.b32.xlu1 %v224_v60, %s1559_s4 }
 0x43e   :  { %v226_v61 = vpop.permute.xlu1 %225 }
 0x43f   :  { %1330 = vmatmul.msk.f32.vlgmr.msra.gmra.mxu3 %vm130_vm6, %v226_v61  ;;  %1331 = vmatmul.msk.f32.vlgmr.msrb.gmra.mxu1 %vm130_vm6, %v226_v61  ;;  %v84_v61 = vpop.f32.mrf.mxu0 }
 0x440   :  { %530 = vmatpush.msra.mxu3 %v1632_v24  ;;  %621 = vmatpush.msrb.mxu1 %v1632_v24 }
 0x442   :  { %531 = vmatpush.msra.mxu3 %v1638_v26  ;;  %622 = vmatpush.msrb.mxu1 %v1638_v26 }
 0x444   :  { %532 = vmatpush.msra.mxu3 %v1642_v28  ;;  %623 = vmatpush.msrb.mxu1 %v1642_v28 }
 0x446   :  { %533 = vmatpush.msra.mxu3 %v1650_v30  ;;  %624 = vmatpush.msrb.mxu1 %v1650_v30 }
 0x4c2   :  { %v246_v62 = vpop.f32.mrf.mxu3 }
 0x4c3   :  { %v271_v63 = vrot.slane %v246_v62, 4  ;;  %v1737_v62 = vadd.f32 %v1620_v2, %v84_v61 }
 0x4c5   :  { %v273_v0 = vadd.f32 %v271_v63, %v1623_v4 }
 0x4c7   :  { %1391 = vtanh.f32 %v273_v0  ;;  %v1332_v3 = vmul.f32 -1.442695, %v273_v0 }
 0x4c9   :  { %1393 = vpow2.f32 %v1332_v3 }
 0x4cd   :  { %v1392_v1 = vpop.eup %1391 }
 0x4ce   :  { %299 = vrot.lane.b32.xlu2 %v1392_v1, %s1558_s1 }
 0x4cf   :  { %v1394_v5 = vpop.eup %1393 }
 0x4d0   :  { %v277_v6 = vadd.f32 1.0, %v1394_v5 }
 0x4d2   :  { %1395 = vrcp.f32 %v277_v6  ;;  %v289_v12 = vand.u32 2147483648, %v277_v6  ;;  %vm283_vm12 = vweird.f32 %v277_v6  ;;  %v287_v13 = vand.u32 2147483647, %v277_v6 }
 0x4d4   :  { %v290_v15 = vor.u32 1.1754944e-38, %v289_v12  ;;  %vm288_vm14 = vcmp.eq.f32.partialorder %v287_v13, 8.507059e+37 }
 0x4d8   :  { %v1396_v7 = vpop.eup %1395 }
 0x4d9   :  { %v279_v8 = vmul.f32 %v1396_v7, %v277_v6  ;;  %vm284_vm11 = vweird.f32 %v1396_v7 }
 0x4da   :  { %vm285_vm13 = vmor %vm283_vm12, %vm284_vm11 }
 0x4db   :  { %v280_v9 = vsub.f32 1.0, %v279_v8 }
 0x4dd   :  { %v281_v10 = vmul.f32 %v1396_v7, %v280_v9 }
 0x4df   :  { %v282_v11 = vadd.f32 %v1396_v7, %v281_v10 }
 0x4e1   :  { %v286_v14 = vsel %vm285_vm13, %v1396_v7, %v282_v11 }
 0x4e2   :  { %v291_v17 = vsel %vm288_vm14, %v290_v15, %v286_v14 }
 0x4e3   :  { %v297_v20 = vmul.f32 %v295_v19, %v291_v17  ;;  %v1749_v19 = vld [vmem:[%s1923_s5] ss:$0 sm:$0xff] }
 0x528   :  { %v300_v16 = vpop.permute.xlu2 %299 }
 0x529   :  { %v302_v18 = vmul.f32 %v300_v16, %v291_v17 }
 0x52b   :  { %304 = vrot.lane.b32.xlu0 %v302_v18, %s1559_s4 }
 0x59d   :  { %v305_v21 = vpop.permute.xlu0 %304 }
 0x59e   :  { %v307_v22 = vadd.f32 %v305_v21, %v297_v20  ;;  %v176_v20 = vadd.f32 %v1749_v19, %v1719_v36 }
 0x5a0   :  { %1397 = vtanh.f32 %v307_v22  ;;  %v386_v51 = vrot.slane %v307_v22, 6  ;;  %v1349_v36 = vmul.f32 -1.442695, %v176_v20 }
 0x5a6   :  { %v1398_v31 = vpop.eup %1397 }
 0x5a7   :  { %310 = vrot.lane.b32.xlu1 %v1398_v31, %s1558_s1 }
 0x619   :  { %v311_v32 = vpop.permute.xlu1 %310 }
 0x61a   :  { %v313_v33 = vmul.f32 %v311_v32, %v291_v17 }
 0x61c   :  { %v315_v34 = vrot.slane %v313_v33, 4 }
 0x61e   :  { %316 = vrot.lane.b32.xlu2 %v315_v34, %s1559_s4 }
 0x678   :  { %v317_v35 = vpop.permute.xlu2 %316 }
 0x679   :  { %1333 = vmatmul.msk.f32.vlgmr.msrb.gmra.mxu2 %vm130_vm6, %v317_v35  ;;  %1334 = vmatmul.msk.f32.vlgmr.msrb.gmra.mxu3 %vm130_vm6, %v317_v35 }
 0x67a   :  { %692 = vmatpush.msrb.mxu2 %v1630_v23  ;;  %712 = vmatpush.msrb.mxu3 %v1632_v24 }
 0x67c   :  { %693 = vmatpush.msrb.mxu2 %v1634_v25  ;;  %713 = vmatpush.msrb.mxu3 %v1638_v26 }
 0x67e   :  { %694 = vmatpush.msrb.mxu2 %v1640_v27  ;;  %714 = vmatpush.msrb.mxu3 %v1642_v28 }
 0x680   :  { %695 = vmatpush.msrb.mxu2 %v1648_v29  ;;  %715 = vmatpush.msrb.mxu3 %v1650_v30 }
 0x6fc   :  { %v337_v37 = vpop.f32.mrf.mxu2 }
 0x6fd   :  { %v362_v38 = vrot.slane %v337_v37, 2 }
 0x6ff   :  { %v364_v23 = vadd.f32 %v362_v38, %v1623_v4 }
 0x701   :  { %1399 = vtanh.f32 %v364_v23  ;;  %v1335_v25 = vmul.f32 -1.442695, %v364_v23 }
 0x703   :  { %1401 = vpow2.f32 %v1335_v25 }
 0x707   :  { %v1400_v39 = vpop.eup %1399 }
 0x708   :  { %390 = vrot.lane.b32.xlu0 %v1400_v39, %s1558_s1 }
 0x709   :  { %v1402_v40 = vpop.eup %1401 }
 0x70a   :  { %v368_v27 = vadd.f32 1.0, %v1402_v40 }
 0x70c   :  { %1403 = vrcp.f32 %v368_v27  ;;  %v380_v45 = vand.u32 2147483648, %v368_v27  ;;  %vm374_vm0 = vweird.f32 %v368_v27  ;;  %v378_v46 = vand.u32 2147483647, %v368_v27 }
 0x70e   :  { %v381_v47 = vor.u32 1.1754944e-38, %v380_v45  ;;  %vm379_vm3 = vcmp.eq.f32.partialorder %v378_v46, 8.507059e+37 }
 0x712   :  { %v1404_v41 = vpop.eup %1403 }
 0x713   :  { %v370_v42 = vmul.f32 %v1404_v41, %v368_v27  ;;  %vm375_vm15 = vweird.f32 %v1404_v41 }
 0x714   :  { %vm376_vm2 = vmor %vm374_vm0, %vm375_vm15 }
 0x715   :  { %v371_v29 = vsub.f32 1.0, %v370_v42 }
 0x717   :  { %v372_v43 = vmul.f32 %v1404_v41, %v371_v29 }
 0x719   :  { %v373_v44 = vadd.f32 %v1404_v41, %v372_v43 }
 0x71b   :  { %v377_v4 = vsel %vm376_vm2, %v1404_v41, %v373_v44 }
 0x71c   :  { %v382_v49 = vsel %vm379_vm3, %v381_v47, %v377_v4 }
 0x71d   :  { %v388_v52 = vmul.f32 %v386_v51, %v382_v49 }
 0x77a   :  { %v391_v48 = vpop.permute.xlu0 %390 }
 0x77b   :  { %v393_v50 = vmul.f32 %v391_v48, %v382_v49 }
 0x77d   :  { %395 = vrot.lane.b32.xlu1 %v393_v50, %s1559_s4 }
 0x7ef   :  { %v396_v53 = vpop.permute.xlu1 %395 }
 0x7f0   :  { %v398_v54 = vadd.f32 %v396_v53, %v388_v52 }
 0x7f2   :  { %1405 = vtanh.f32 %v398_v54  ;;  %v474_v14 = vrot.slane %v398_v54, 6 }
 0x7f8   :  { %v1406_v55 = vpop.eup %1405 }
 0x7f9   :  { %401 = vrot.lane.b32.xlu2 %v1406_v55, %s1558_s1 }
 0x853   :  { %v402_v57 = vpop.permute.xlu2 %401 }
 0x854   :  { %v404_v58 = vmul.f32 %v402_v57, %v382_v49 }
 0x856   :  { %v406_v59 = vrot.slane %v404_v58, 6 }
 0x858   :  { %407 = vrot.lane.b32.xlu0 %v406_v59, %s1559_s4 }
 0x8ca   :  { %v408_v60 = vpop.permute.xlu0 %407 }
 0x8cb   :  { %1336 = vmatmul.msk.f32.vlgmr.msrb.gmra.mxu0 %vm130_vm6, %v408_v60  ;;  %1337 = vmatmul.msk.f32.vlgmr.msra.gmra.mxu1 %vm130_vm6, %v408_v60 }
 0x8cc   :  { %783 = vmatpush.msrb.mxu0 %v1632_v24 }
 0x8ce   :  { %784 = vmatpush.msrb.mxu0 %v1638_v26 }
 0x8d0   :  { %785 = vmatpush.msrb.mxu0 %v1642_v28 }
 0x8d2   :  { %786 = vmatpush.msrb.mxu0 %v1650_v30 }
 0x948   :  { %v428_v63 = vpop.f32.mrf.mxu0 }
 0x949   :  { %v452_v0 = vadd.f32 %v428_v63, %v1737_v62 }
 0x94b   :  { %1407 = vtanh.f32 %v452_v0  ;;  %v1338_v3 = vmul.f32 -1.442695, %v452_v0 }
 0x94d   :  { %1409 = vpow2.f32 %v1338_v3 }
 0x951   :  { %v1408_v1 = vpop.eup %1407 }
 0x952   :  { %478 = vrot.lane.b32.xlu1 %v1408_v1, %s1558_s1 }
 0x953   :  { %v1410_v24 = vpop.eup %1409 }
 0x954   :  { %v456_v5 = vadd.f32 1.0, %v1410_v24 }
 0x956   :  { %1411 = vrcp.f32 %v456_v5  ;;  %v468_v2 = vand.u32 2147483648, %v456_v5  ;;  %vm462_vm4 = vweird.f32 %v456_v5  ;;  %v466_v8 = vand.u32 2147483647, %v456_v5 }
 0x958   :  { %v469_v10 = vor.u32 1.1754944e-38, %v468_v2  ;;  %vm467_vm7 = vcmp.eq.f32.partialorder %v466_v8, 8.507059e+37  ;;  %v1774_v2 = vld [vmem:[%s1921_s3 + $0x18] sm:$0xff]  ;;  %v1779_v8 = vld [vmem:[%s1921_s3 + $0x10] sm:$0xff] }
 0x959   :  { %843 = vmatpush.msra.mxu1 %v1774_v2 }
 0x95b   :  { %844 = vmatpush.msra.mxu1 %v1779_v8 }
 0x95c   :  { %v1412_v26 = vpop.eup %1411 }
 0x95d   :  { %v458_v28 = vmul.f32 %v1412_v26, %v456_v5  ;;  %vm463_vm1 = vweird.f32 %v1412_v26 }
 0x95e   :  { %vm464_vm5 = vmor %vm462_vm4, %vm463_vm1 }
 0x95f   :  { %v459_v6 = vsub.f32 1.0, %v458_v28 }
 0x961   :  { %v460_v30 = vmul.f32 %v1412_v26, %v459_v6 }
 0x963   :  { %v461_v7 = vadd.f32 %v1412_v26, %v460_v30 }
 0x965   :  { %v465_v9 = vsel %vm464_vm5, %v1412_v26, %v461_v7 }
 0x966   :  { %v470_v12 = vsel %vm467_vm7, %v469_v10, %v465_v9  ;;  %v1786_v9 = vld [vmem:[%s1921_s3 + $0x8] sm:$0xff]  ;;  %v1794_v10 = vld [vmem:[%s1921_s3] sm:$0xff] }
 0x967   :  { %v476_v15 = vmul.f32 %v474_v14, %v470_v12  ;;  %845 = vmatpush.msra.mxu1 %v1786_v9 }
 0x969   :  { %846 = vmatpush.msra.mxu1 %v1794_v10 }
 0x9c4   :  { %v479_v11 = vpop.permute.xlu1 %478 }
 0x9c5   :  { %v481_v13 = vmul.f32 %v479_v11, %v470_v12 }
 0x9c7   :  { %483 = vrot.lane.b32.xlu2 %v481_v13, %s1559_s4  ;;  %v266_v13 = vpop.f32.mrf.mxu1 }
 0x9cf   :  { %v1814_v14 = vpop.f32.mrf.mxu1 }
 0xa21   :  { %v484_v16 = vpop.permute.xlu2 %483 }
 0xa22   :  { %v1742_v17 = vadd.f32 %v484_v16, %v476_v15 }
 0xa24   :  { %1413 = vtanh.f32 %v1742_v17  ;;  %v564_v0 = vrot.slane %v1742_v17, 6 }
 0xa25   :  { %1415 = vtanh.f32 %v176_v20  ;;  %v269_v20 = vadd.f32 %v1749_v19, %v266_v13 }
 0xa2a   :  { %v1414_v18 = vpop.eup %1413 }
 0xa2b   :  { %489 = vrot.lane.b32.xlu0 %v1414_v18, %s1558_s1  ;;  %v1416_v31 = vpop.eup %1415 }
 0xa9d   :  { %v490_v21 = vpop.permute.xlu0 %489 }
 0xa9e   :  { %v492_v22 = vmul.f32 %v490_v21, %v470_v12 }
 0xaa0   :  { %494 = vrot.lane.b32.xlu1 %v492_v22, %s1559_s4 }
 0xaa8   :  { %816 = vrot.lane.b32.xlu1 %v1416_v31, %s1558_s1 }
 0xb12   :  { %v495_v32 = vpop.permute.xlu1 %494 }
 0xb13   :  { %1339 = vmatmul.msk.f32.vlgmr.msra.gmra.mxu2 %vm130_vm6, %v495_v32  ;;  %1340 = vmatmul.msk.f32.vlgmr.msra.gmra.mxu3 %vm130_vm6, %v495_v32 }
 0xb14   :  { %910 = vmatpush.msra.mxu2 %v1774_v2  ;;  %973 = vmatpush.msra.mxu3 %v1774_v2 }
 0xb16   :  { %911 = vmatpush.msra.mxu2 %v1779_v8  ;;  %974 = vmatpush.msra.mxu3 %v1779_v8 }
 0xb18   :  { %912 = vmatpush.msra.mxu2 %v1786_v9  ;;  %975 = vmatpush.msra.mxu3 %v1786_v9 }
 0xb1a   :  { %v817_v54 = vpop.permute.xlu1 %816  ;;  %913 = vmatpush.msra.mxu2 %v1794_v10  ;;  %976 = vmatpush.msra.mxu3 %v1794_v10 }
 0xb96   :  { %v515_v33 = vpop.f32.mrf.mxu2 }
 0xb97   :  { %v540_v34 = vrot.slane %v515_v33, 6 }
 0xb99   :  { %v542_v35 = vadd.f32 %v540_v34, %v1737_v62 }
 0xb9b   :  { %1417 = vtanh.f32 %v542_v35  ;;  %v1341_v38 = vmul.f32 -1.442695, %v542_v35 }
 0xb9c   :  { %1419 = vpow2.f32 %v1349_v36 }
 0xb9d   :  { %1421 = vpow2.f32 %v1341_v38 }
 0xba1   :  { %v1418_v37 = vpop.eup %1417 }
 0xba2   :  { %568 = vrot.lane.b32.xlu2 %v1418_v37, %s1558_s1  ;;  %v1420_v23 = vpop.eup %1419 }
 0xba3   :  { %v1422_v39 = vpop.eup %1421  ;;  %v798_v25 = vadd.f32 1.0, %v1420_v23 }
 0xba4   :  { %v546_v40 = vadd.f32 1.0, %v1422_v39 }
 0xba5   :  { %1423 = vrcp.f32 %v798_v25  ;;  %v810_v47 = vand.u32 2147483648, %v798_v25  ;;  %vm804_vm10 = vweird.f32 %v798_v25  ;;  %v808_v49 = vand.u32 2147483647, %v798_v25 }
 0xba6   :  { %1425 = vrcp.f32 %v546_v40  ;;  %v558_v50 = vand.u32 2147483648, %v546_v40  ;;  %vm552_vm12 = vweird.f32 %v546_v40  ;;  %v556_v51 = vand.u32 2147483647, %v546_v40 }
 0xba7   :  { %v811_v53 = vor.u32 1.1754944e-38, %v810_v47  ;;  %vm809_vm14 = vcmp.eq.f32.partialorder %v808_v49, 8.507059e+37 }
 0xba8   :  { %v559_v56 = vor.u32 1.1754944e-38, %v558_v50  ;;  %vm557_vm15 = vcmp.eq.f32.partialorder %v556_v51, 8.507059e+37 }
 0xbab   :  { %v1424_v27 = vpop.eup %1423 }
 0xbac   :  { %v1426_v41 = vpop.eup %1425  ;;  %v800_v42 = vmul.f32 %v1424_v27, %v798_v25  ;;  %vm805_vm8 = vweird.f32 %v1424_v27 }
 0xbad   :  { %v548_v29 = vmul.f32 %v1426_v41, %v546_v40  ;;  %vm553_vm9 = vweird.f32 %v1426_v41  ;;  %vm806_vm11 = vmor %vm804_vm10, %vm805_vm8 }
 0xbae   :  { %v801_v43 = vsub.f32 1.0, %v800_v42  ;;  %vm554_vm13 = vmor %vm552_vm12, %vm553_vm9 }
 0xbaf   :  { %v549_v44 = vsub.f32 1.0, %v548_v29 }
 0xbb0   :  { %v802_v45 = vmul.f32 %v1424_v27, %v801_v43 }
 0xbb1   :  { %v550_v46 = vmul.f32 %v1426_v41, %v549_v44 }
 0xbb2   :  { %v803_v4 = vadd.f32 %v1424_v27, %v802_v45 }
 0xbb3   :  { %v551_v48 = vadd.f32 %v1426_v41, %v550_v46 }
 0xbb4   :  { %v807_v52 = vsel %vm806_vm11, %v1424_v27, %v803_v4 }
 0xbb5   :  { %v555_v55 = vsel %vm554_vm13, %v1426_v41, %v551_v48  ;;  %v812_v57 = vsel %vm809_vm14, %v811_v53, %v807_v52 }
 0xbb6   :  { %v1759_v58 = vmul.f32 %v817_v54, %v812_v57  ;;  %v560_v60 = vsel %vm557_vm15, %v559_v56, %v555_v55 }
 0xbb7   :  { %v566_v1 = vmul.f32 %v564_v0, %v560_v60 }
 0xbb8   :  { %1427 = vtanh.f32 %v1759_v58 }
 0xbbe   :  { %v1428_v63 = vpop.eup %1427 }
 0xbfc   :  { %v569_v59 = vpop.permute.xlu2 %568 }
 0xbfd   :  { %v571_v61 = vmul.f32 %v569_v59, %v560_v60 }
 0xbff   :  { %573 = vrot.lane.b32.xlu0 %v571_v61, %s1559_s4 }
 0xc07   :  { %822 = vrot.lane.b32.xlu0 %v1428_v63, %s1560_s17  ;;  %s1313_s17 = sshll.u32 %s1926_s8, 4  ;;  %s1314_s17 = int_to_ptr.hbm [resolvable:$true] %s1313_s17 }
 0xc71   :  { %v574_v3 = vpop.permute.xlu0 %573 }
 0xc72   :  { %v1765_v24 = vadd.f32 %v574_v3, %v566_v1 }
 0xc74   :  { %1429 = vtanh.f32 %v1765_v24 }
 0xc79   :  { %v823_v26 = vpop.permute.xlu0 %822 }
 0xc7a   :  { %v1430_v5 = vpop.eup %1429  ;;  %v825_v28 = vmul.f32 %v823_v26, %v812_v57 }
 0xc7b   :  { %579 = vrot.lane.b32.xlu2 %v1430_v5, %s1558_s1 }
 0xc83   :  { %827 = vrot.lane.b32.xlu2 %v825_v28, %s1559_s4 }
 0xcd5   :  { %v580_v6 = vpop.permute.xlu2 %579 }
 0xcd6   :  { %v582_v30 = vmul.f32 %v580_v6, %v560_v60 }
 0xcd8   :  { %v584_v7 = vrot.slane %v582_v30, 2 }
 0xcda   :  { %585 = vrot.lane.b32.xlu1 %v584_v7, %s1559_s4 }
 0xcdd   :  { %v828_v12 = vpop.permute.xlu2 %827 }
 0xd4c   :  { %v586_v11 = vpop.permute.xlu1 %585 }
 0xd4d   :  { %1342 = vmatmul.msk.f32.vlgmr.msra.gmra.mxu0 %vm130_vm6, %v586_v11  ;;  %1343 = vmatmul.msk.f32.vlgmr.msrb.gmra.mxu1 %vm130_vm6, %v586_v11 }
 0xd4e   :  { %1036 = vmatpush.msra.mxu0 %v1774_v2  ;;  %1099 = vmatpush.msrb.mxu1 %v1774_v2 }
 0xd50   :  { %1037 = vmatpush.msra.mxu0 %v1779_v8  ;;  %1100 = vmatpush.msrb.mxu1 %v1779_v8 }
 0xd52   :  { %1038 = vmatpush.msra.mxu0 %v1786_v9  ;;  %1101 = vmatpush.msrb.mxu1 %v1786_v9 }
 0xd54   :  { %1039 = vmatpush.msra.mxu0 %v1794_v10  ;;  %1102 = vmatpush.msrb.mxu1 %v1794_v10 }
 0xd55   :  { %1350 = vmatmul.msk.f32.vlgmr.msra.gmra.mxu1 %vm130_vm6, %v828_v12 }
 0xdca   :  { %v606_v15 = vpop.f32.mrf.mxu0  ;;  %v1816_v16 = vpop.f32.mrf.mxu1 }
 0xdcb   :  { %v631_v17 = vrot.slane %v606_v15, 4  ;;  %v357_v15 = vpop.f32.mrf.mxu3 }
 0xdcd   :  { %v633_v18 = vadd.f32 %v631_v17, %v1737_v62  ;;  %v360_v17 = vadd.f32 %v1749_v19, %v357_v15 }
 0xdcf   :  { %1431 = vtanh.f32 %v633_v18  ;;  %v1344_v33 = vmul.f32 -1.442695, %v633_v18 }
 0xdd2   :  { %v848_v21 = vpop.f32.mrf.mxu1 }
 0xdd3   :  { %v851_v22 = vadd.f32 %v848_v21, %v269_v20 }
 0xdd5   :  { %v1432_v31 = vpop.eup %1431  ;;  %1433 = vtanh.f32 %v851_v22  ;;  %v1351_v34 = vmul.f32 -1.442695, %v851_v22 }
 0xdd6   :  { %659 = vrot.lane.b32.xlu0 %v1432_v31, %s1558_s1  ;;  %1435 = vpow2.f32 %v1344_v33 }
 0xdd7   :  { %1437 = vpow2.f32 %v1351_v34 }
 0xddb   :  { %v1434_v32 = vpop.eup %1433 }
 0xddc   :  { %878 = vrot.lane.b32.xlu1 %v1434_v32, %s1558_s1  ;;  %v1436_v35 = vpop.eup %1435 }
 0xddd   :  { %v637_v37 = vadd.f32 1.0, %v1436_v35  ;;  %v1438_v36 = vpop.eup %1437 }
 0xdde   :  { %873 = vrot.lane.b32.xlu0 %v1759_v58, %s1559_s4  ;;  %v855_v38 = vadd.f32 1.0, %v1438_v36  ;;  %v655_v58 = vrot.slane %v1765_v24, 6 }
 0xddf   :  { %1439 = vrcp.f32 %v637_v37  ;;  %v649_v43 = vand.u32 2147483648, %v637_v37  ;;  %vm643_vm2 = vweird.f32 %v637_v37  ;;  %v647_v44 = vand.u32 2147483647, %v637_v37 }
 0xde0   :  { %1441 = vrcp.f32 %v855_v38  ;;  %v867_v50 = vand.u32 2147483648, %v855_v38  ;;  %vm861_vm5 = vweird.f32 %v855_v38  ;;  %v865_v52 = vand.u32 2147483647, %v855_v38 }
 0xde1   :  { %v650_v4 = vor.u32 1.1754944e-38, %v649_v43  ;;  %vm648_vm1 = vcmp.eq.f32.partialorder %v647_v44, 8.507059e+37 }
 0xde2   :  { %v868_v54 = vor.u32 1.1754944e-38, %v867_v50  ;;  %vm866_vm8 = vcmp.eq.f32.partialorder %v865_v52, 8.507059e+37 }
 0xde5   :  { %v1440_v23 = vpop.eup %1439 }
 0xde6   :  { %v639_v39 = vmul.f32 %v1440_v23, %v637_v37  ;;  %v1442_v25 = vpop.eup %1441  ;;  %vm644_vm0 = vweird.f32 %v1440_v23 }
 0xde7   :  { %v857_v27 = vmul.f32 %v1442_v25, %v855_v38  ;;  %vm645_vm3 = vmor %vm643_vm2, %vm644_vm0  ;;  %vm862_vm4 = vweird.f32 %v1442_v25 }
 0xde8   :  { %v640_v40 = vsub.f32 1.0, %v639_v39  ;;  %vm863_vm7 = vmor %vm861_vm5, %vm862_vm4 }
 0xde9   :  { %v858_v42 = vsub.f32 1.0, %v857_v27 }
 0xdea   :  { %v641_v41 = vmul.f32 %v1440_v23, %v640_v40 }
 0xdeb   :  { %v859_v45 = vmul.f32 %v1442_v25, %v858_v42 }
 0xdec   :  { %v642_v29 = vadd.f32 %v1440_v23, %v641_v41 }
 0xded   :  { %v860_v47 = vadd.f32 %v1442_v25, %v859_v45 }
 0xdee   :  { %v646_v46 = vsel %vm645_vm3, %v1440_v23, %v642_v29 }
 0xdef   :  { %v651_v49 = vsel %vm648_vm1, %v650_v4, %v646_v46  ;;  %v864_v53 = vsel %vm863_vm7, %v1442_v25, %v860_v47 }
 0xdf0   :  { %v869_v56 = vsel %vm866_vm8, %v868_v54, %v864_v53  ;;  %v657_v59 = vmul.f32 %v655_v58, %v651_v49 }
 0xe48   :  { %v660_v48 = vpop.permute.xlu0 %659 }
 0xe49   :  { %v662_v51 = vmul.f32 %v660_v48, %v651_v49 }
 0xe4b   :  { %664 = vrot.lane.b32.xlu2 %v662_v51, %s1559_s4 }
 0xe4e   :  { %v879_v55 = vpop.permute.xlu1 %878 }
 0xe4f   :  { %v881_v57 = vmul.f32 %v879_v55, %v869_v56 }
 0xe50   :  { %v874_v0 = vpop.permute.xlu0 %873 }
 0xe51   :  { %883 = vrot.lane.b32.xlu1 %v881_v57, %s1559_s4  ;;  %v876_v1 = vmul.f32 %v874_v0, %v869_v56  ;;  %v451_v0 = vadd.f32 %v1749_v19, %v1814_v14 }
 0xea5   :  { %v665_v60 = vpop.permute.xlu2 %664 }
 0xea6   :  { %v1827_v61 = vadd.f32 %v665_v60, %v657_v59  ;;  %v535_v60 = vpop.f32.mrf.mxu3 }
 0xea8   :  { %1443 = vtanh.f32 %v1827_v61 }
 0xeae   :  { %v1444_v63 = vpop.eup %1443 }
 0xeaf   :  { %670 = vrot.lane.b32.xlu2 %v1444_v63, %s1558_s1 }
 0xec3   :  { %v884_v3 = vpop.permute.xlu1 %883 }
 0xec4   :  { %v886_v5 = vadd.f32 %v884_v3, %v876_v1 }
 0xec6   :  { %1445 = vtanh.f32 %v886_v5 }
 0xecc   :  { %v1446_v26 = vpop.eup %1445 }
 0xecd   :  { %889 = vrot.lane.b32.xlu0 %v1446_v26, %s1558_s1 }
 0xf09   :  { %v671_v28 = vpop.permute.xlu2 %670 }
 0xf0a   :  { %v673_v6 = vmul.f32 %v671_v28, %v651_v49 }
 0xf0c   :  { %v675_v24 = vrot.slane %v673_v6, 4 }
 0xf0e   :  { %676 = vrot.lane.b32.xlu1 %v675_v24, %s1559_s4 }
 0xf3f   :  { %v890_v30 = vpop.permute.xlu0 %889 }
 0xf40   :  { %v892_v7 = vmul.f32 %v890_v30, %v869_v56 }
 0xf42   :  { %894 = vrot.lane.b32.xlu2 %v892_v7, %s1559_s4 }
 0xf80   :  { %v677_v11 = vpop.permute.xlu1 %676 }
 0xf81   :  { %1345 = vmatmul.msk.f32.vlgmr.msrb.gmra.mxu2 %vm130_vm6, %v677_v11  ;;  %1346 = vmatmul.msk.f32.vlgmr.msrb.gmra.mxu3 %vm130_vm6, %v677_v11 }
 0xf82   :  { %1162 = vmatpush.msrb.mxu2 %v1774_v2  ;;  %1225 = vmatpush.msrb.mxu3 %v1774_v2 }
 0xf84   :  { %1163 = vmatpush.msrb.mxu2 %v1779_v8  ;;  %1226 = vmatpush.msrb.mxu3 %v1779_v8 }
 0xf86   :  { %1164 = vmatpush.msrb.mxu2 %v1786_v9  ;;  %1227 = vmatpush.msrb.mxu3 %v1786_v9 }
 0xf88   :  { %1165 = vmatpush.msrb.mxu2 %v1794_v10  ;;  %1228 = vmatpush.msrb.mxu3 %v1794_v10 }
 0xf9c   :  { %v895_v12 = vpop.permute.xlu2 %894 }
 0xf9d   :  { %1352 = vmatmul.msk.f32.vlgmr.msra.gmra.mxu2 %vm130_vm6, %v895_v12 }
0x1004   :  { %v697_v13 = vpop.f32.mrf.mxu2  ;;  %v1857_v63 = vpop.f32.mrf.mxu3 }
0x1005   :  { %v722_v37 = vrot.slane %v697_v13, 2 }
0x1007   :  { %v724_v23 = vadd.f32 %v722_v37, %v1737_v62 }
0x1009   :  { %v1347_v44 = vmul.f32 -1.442695, %v724_v23 }
0x1020   :  { %v915_v2 = vpop.f32.mrf.mxu2 }
0x1021   :  { %v918_v18 = vadd.f32 %v915_v2, %v360_v17 }
0x1023   :  { %1447 = vtanh.f32 %v918_v18  ;;  %v1353_v8 = vmul.f32 -1.442695, %v918_v18 }
0x1025   :  { %1449 = vpow2.f32 %v1353_v8 }
0x1029   :  { %v1448_v20 = vpop.eup %1447 }
0x102a   :  { %941 = vrot.lane.b32.xlu0 %v1448_v20, %s1558_s1 }
0x102b   :  { %v1450_v9 = vpop.eup %1449 }
0x102c   :  { %v922_v21 = vadd.f32 1.0, %v1450_v9 }
0x102e   :  { %1451 = vrcp.f32 %v922_v21  ;;  %v934_v34 = vand.u32 2147483648, %v922_v21  ;;  %vm928_vm10 = vweird.f32 %v922_v21  ;;  %v932_v35 = vand.u32 2147483647, %v922_v21 }
0x102f   :  { %1453 = vtanh.f32 %v724_v23 }
0x1030   :  { %v935_v38 = vor.u32 1.1754944e-38, %v934_v34  ;;  %vm933_vm12 = vcmp.eq.f32.partialorder %v932_v35, 8.507059e+37 }
0x1034   :  { %v1452_v22 = vpop.eup %1451 }
0x1035   :  { %v924_v10 = vmul.f32 %v1452_v22, %v922_v21  ;;  %vm929_vm9 = vweird.f32 %v1452_v22  ;;  %v1454_v27 = vpop.eup %1453 }
0x1036   :  { %vm930_vm11 = vmor %vm928_vm10, %vm929_vm9 }
0x1037   :  { %v925_v31 = vsub.f32 1.0, %v924_v10 }
0x1039   :  { %v926_v32 = vmul.f32 %v1452_v22, %v925_v31 }
0x103b   :  { %v927_v33 = vadd.f32 %v1452_v22, %v926_v32 }
0x103d   :  { %v931_v36 = vsel %vm930_vm11, %v1452_v22, %v927_v33 }
0x103e   :  { %v936_v25 = vsel %vm933_vm12, %v935_v38, %v931_v36 }
0x103f   :  { %v939_v41 = vmul.f32 %v936_v25, %v886_v5  ;;  %v746_v5 = vrot.slane %v1827_v61, 6 }
0x109c   :  { %v942_v39 = vpop.permute.xlu0 %941 }
0x109d   :  { %v944_v40 = vmul.f32 %v942_v39, %v936_v25 }
0x109f   :  { %946 = vrot.lane.b32.xlu1 %v944_v40, %s1559_s4  ;;  %v538_v40 = vadd.f32 %v1749_v19, %v535_v60 }
0x10a7   :  { %750 = vrot.lane.b32.xlu1 %v1454_v27, %s1558_s1 }
0x1111   :  { %v947_v42 = vpop.permute.xlu1 %946 }
0x1112   :  { %v1850_v29 = vadd.f32 %v947_v42, %v939_v41 }
0x1114   :  { %1455 = vtanh.f32 %v1850_v29 }
0x1115   :  { %1457 = vpow2.f32 %v1347_v44 }
0x1119   :  { %v751_v56 = vpop.permute.xlu1 %750 }
0x111a   :  { %v1456_v43 = vpop.eup %1455 }
0x111b   :  { %952 = vrot.lane.b32.xlu2 %v1456_v43, %s1558_s1  ;;  %v1458_v62 = vpop.eup %1457 }
0x111c   :  { %v728_v45 = vadd.f32 1.0, %v1458_v62 }
0x111e   :  { %1459 = vrcp.f32 %v728_v45  ;;  %v740_v52 = vand.u32 2147483648, %v728_v45  ;;  %vm734_vm14 = vweird.f32 %v728_v45  ;;  %v738_v53 = vand.u32 2147483647, %v728_v45 }
0x1120   :  { %v741_v55 = vor.u32 1.1754944e-38, %v740_v52  ;;  %vm739_vm0 = vcmp.eq.f32.partialorder %v738_v53, 8.507059e+37 }
0x1124   :  { %v1460_v46 = vpop.eup %1459 }
0x1125   :  { %v730_v4 = vmul.f32 %v1460_v46, %v728_v45  ;;  %vm735_vm13 = vweird.f32 %v1460_v46 }
0x1126   :  { %vm736_vm15 = vmor %vm734_vm14, %vm735_vm13 }
0x1127   :  { %v731_v47 = vsub.f32 1.0, %v730_v4 }
0x1129   :  { %v732_v48 = vmul.f32 %v1460_v46, %v731_v47 }
0x112b   :  { %v733_v50 = vadd.f32 %v1460_v46, %v732_v48 }
0x112d   :  { %v737_v54 = vsel %vm736_vm15, %v1460_v46, %v733_v50 }
0x112e   :  { %v742_v57 = vsel %vm739_vm0, %v741_v55, %v737_v54 }
0x112f   :  { %v753_v58 = vmul.f32 %v751_v56, %v742_v57  ;;  %v748_v28 = vmul.f32 %v746_v5, %v742_v57 }
0x1175   :  { %v953_v49 = vpop.permute.xlu2 %952 }
0x1176   :  { %v955_v51 = vmul.f32 %v953_v49, %v936_v25 }
0x1178   :  { %957 = vrot.lane.b32.xlu0 %v955_v51, %s1559_s4 }
0x1180   :  { %755 = vrot.lane.b32.xlu0 %v753_v58, %s1559_s4 }
0x11ea   :  { %v958_v59 = vpop.permute.xlu0 %957 }
0x11eb   :  { %1354 = vmatmul.msk.f32.vlgmr.msra.gmra.mxu3 %vm130_vm6, %v958_v59 }
0x11f2   :  { %v756_v26 = vpop.permute.xlu0 %755 }
0x11f3   :  { %v758_v6 = vadd.f32 %v756_v26, %v748_v28 }
0x126e   :  { %v978_v1 = vpop.f32.mrf.mxu3 }
0x126f   :  { %v981_v3 = vadd.f32 %v978_v1, %v451_v0  ;;  %v629_v1 = vadd.f32 %v1749_v19, %v1816_v16 }
0x1271   :  { %1461 = vtanh.f32 %v981_v3  ;;  %v1355_v7 = vmul.f32 -1.442695, %v981_v3 }
0x1272   :  { %1463 = vtanh.f32 %v758_v6 }
0x1273   :  { %1465 = vpow2.f32 %v1355_v7 }
0x1277   :  { %v1462_v24 = vpop.eup %1461 }
0x1278   :  { %1004 = vrot.lane.b32.xlu2 %v1462_v24, %s1558_s1  ;;  %v1464_v30 = vpop.eup %1463 }
0x1279   :  { %v1466_v11 = vpop.eup %1465 }
0x127a   :  { %v985_v12 = vadd.f32 1.0, %v1466_v11 }
0x127c   :  { %1467 = vrcp.f32 %v985_v12  ;;  %v997_v2 = vand.u32 2147483648, %v985_v12  ;;  %vm991_vm3 = vweird.f32 %v985_v12  ;;  %v995_v18 = vand.u32 2147483647, %v985_v12 }
0x127e   :  { %v998_v8 = vor.u32 1.1754944e-38, %v997_v2  ;;  %vm996_vm4 = vcmp.eq.f32.partialorder %v995_v18, 8.507059e+37 }
0x1280   :  { %761 = vrot.lane.b32.xlu2 %v1464_v30, %s1558_s1 }
0x1282   :  { %v1468_v14 = vpop.eup %1467 }
0x1283   :  { %v987_v13 = vmul.f32 %v1468_v14, %v985_v12  ;;  %vm992_vm2 = vweird.f32 %v1468_v14 }
0x1284   :  { %vm993_vm1 = vmor %vm991_vm3, %vm992_vm2 }
0x1285   :  { %v988_v15 = vsub.f32 1.0, %v987_v13 }
0x1287   :  { %v989_v61 = vmul.f32 %v1468_v14, %v988_v15 }
0x1289   :  { %v990_v17 = vadd.f32 %v1468_v14, %v989_v61 }
0x128b   :  { %v994_v20 = vsel %vm993_vm1, %v1468_v14, %v990_v17 }
0x128c   :  { %v999_v21 = vsel %vm996_vm4, %v998_v8, %v994_v20 }
0x128d   :  { %v1002_v33 = vmul.f32 %v999_v21, %v1850_v29 }
0x12d2   :  { %v1005_v9 = vpop.permute.xlu2 %1004 }
0x12d3   :  { %v1007_v22 = vmul.f32 %v1005_v9, %v999_v21 }
0x12d5   :  { %1009 = vrot.lane.b32.xlu1 %v1007_v22, %s1559_s4 }
0x12da   :  { %v762_v10 = vpop.permute.xlu2 %761 }
0x12db   :  { %v764_v31 = vmul.f32 %v762_v10, %v742_v57 }
0x12dd   :  { %v766_v32 = vrot.slane %v764_v31, 6 }
0x12df   :  { %767 = vrot.lane.b32.xlu1 %v766_v32, %s1559_s4  ;;  %v720_v32 = vadd.f32 %v1749_v19, %v1857_v63 }
0x1347   :  { %v1010_v34 = vpop.permute.xlu1 %1009 }
0x1348   :  { %v1012_v35 = vadd.f32 %v1010_v34, %v1002_v33 }
0x134a   :  { %1469 = vtanh.f32 %v1012_v35 }
0x1350   :  { %v1470_v37 = vpop.eup %1469 }
0x1351   :  { %1015 = vrot.lane.b32.xlu0 %v1470_v37, %s1558_s1  ;;  %v768_v36 = vpop.permute.xlu1 %767 }
0x1352   :  { %1348 = vmatmul.msk.f32.vlgmr.msrb.gmra.mxu0 %vm130_vm6, %v768_v36 }
0x13c3   :  { %v1016_v38 = vpop.permute.xlu0 %1015 }
0x13c4   :  { %v1018_v23 = vmul.f32 %v1016_v38, %v999_v21 }
0x13c6   :  { %1020 = vrot.lane.b32.xlu2 %v1018_v23, %s1559_s4 }
0x13cf   :  { %v1871_v25 = vpop.f32.mrf.mxu0 }
0x1420   :  { %v1021_v39 = vpop.permute.xlu2 %1020 }
0x1421   :  { %1356 = vmatmul.msk.f32.vlgmr.msra.gmra.mxu0 %vm130_vm6, %v1021_v39 }
0x149e   :  { %v1041_v27 = vpop.f32.mrf.mxu0 }
0x149f   :  { %v1044_v41 = vadd.f32 %v1041_v27, %v538_v40 }
0x14a1   :  { %1471 = vtanh.f32 %v1044_v41  ;;  %v1357_v29 = vmul.f32 -1.442695, %v1044_v41 }
0x14a3   :  { %1473 = vpow2.f32 %v1357_v29 }
0x14a7   :  { %v1472_v42 = vpop.eup %1471 }
0x14a8   :  { %1067 = vrot.lane.b32.xlu0 %v1472_v42, %s1558_s1 }
0x14a9   :  { %v1474_v43 = vpop.eup %1473 }
0x14aa   :  { %v1048_v44 = vadd.f32 1.0, %v1474_v43 }
0x14ac   :  { %1475 = vrcp.f32 %v1048_v44  ;;  %v1060_v48 = vand.u32 2147483648, %v1048_v44  ;;  %vm1054_vm7 = vweird.f32 %v1048_v44  ;;  %v1058_v49 = vand.u32 2147483647, %v1048_v44 }
0x14ae   :  { %v1061_v51 = vor.u32 1.1754944e-38, %v1060_v48  ;;  %vm1059_vm9 = vcmp.eq.f32.partialorder %v1058_v49, 8.507059e+37 }
0x14b2   :  { %v1476_v62 = vpop.eup %1475 }
0x14b3   :  { %v1050_v45 = vmul.f32 %v1476_v62, %v1048_v44  ;;  %vm1055_vm5 = vweird.f32 %v1476_v62 }
0x14b4   :  { %vm1056_vm8 = vmor %vm1054_vm7, %vm1055_vm5  ;;  %vm1304_vm7 = vcmask 25600  }
0x14b5   :  { %v1051_v46 = vsub.f32 1.0, %v1050_v45 }
0x14b7   :  { %v1052_v4 = vmul.f32 %v1476_v62, %v1051_v46 }
0x14b9   :  { %v1053_v47 = vadd.f32 %v1476_v62, %v1052_v4 }
0x14bb   :  { %v1057_v50 = vsel %vm1056_vm8, %v1476_v62, %v1053_v47 }
0x14bc   :  { %v1062_v53 = vsel %vm1059_vm9, %v1061_v51, %v1057_v50 }
0x14bd   :  { %v1065_v55 = vmul.f32 %v1062_v53, %v1012_v35 }
0x151a   :  { %v1068_v52 = vpop.permute.xlu0 %1067 }
0x151b   :  { %v1070_v54 = vmul.f32 %v1068_v52, %v1062_v53  ;;  %v789_v52 = vadd.f32 %v1749_v19, %v1871_v25 }
0x151d   :  { %1072 = vrot.lane.b32.xlu1 %v1070_v54, %s1559_s4 }
0x158f   :  { %v1073_v56 = vpop.permute.xlu1 %1072 }
0x1590   :  { %v1075_v57 = vadd.f32 %v1073_v56, %v1065_v55 }
0x1592   :  { %1477 = vtanh.f32 %v1075_v57 }
0x1598   :  { %v1478_v58 = vpop.eup %1477 }
0x1599   :  { %1078 = vrot.lane.b32.xlu2 %v1478_v58, %s1558_s1 }
0x15f3   :  { %v1079_v59 = vpop.permute.xlu2 %1078 }
0x15f4   :  { %v1081_v60 = vmul.f32 %v1079_v59, %v1062_v53 }
0x15f6   :  { %1083 = vrot.lane.b32.xlu0 %v1081_v60, %s1559_s4 }
0x1668   :  { %v1084_v0 = vpop.permute.xlu0 %1083 }
0x1669   :  { %1358 = vmatmul.msk.f32.vlgmr.msrb.gmra.mxu1 %vm130_vm6, %v1084_v0 }
0x16e6   :  { %v1104_v3 = vpop.f32.mrf.mxu1 }
0x16e7   :  { %v1107_v5 = vadd.f32 %v1104_v3, %v629_v1 }
0x16e9   :  { %1479 = vtanh.f32 %v1107_v5  ;;  %v1359_v28 = vmul.f32 -1.442695, %v1107_v5 }
0x16eb   :  { %1481 = vpow2.f32 %v1359_v28 }
0x16ef   :  { %v1480_v26 = vpop.eup %1479 }
0x16f0   :  { %1130 = vrot.lane.b32.xlu1 %v1480_v26, %s1558_s1 }
0x16f1   :  { %v1482_v6 = vpop.eup %1481 }
0x16f2   :  { %v1111_v24 = vadd.f32 1.0, %v1482_v6 }
0x16f4   :  { %1483 = vrcp.f32 %v1111_v24  ;;  %v1123_v13 = vand.u32 2147483648, %v1111_v24  ;;  %vm1117_vm11 = vweird.f32 %v1111_v24  ;;  %v1121_v16 = vand.u32 2147483647, %v1111_v24 }
0x16f6   :  { %v1124_v61 = vor.u32 1.1754944e-38, %v1123_v13  ;;  %vm1122_vm13 = vcmp.eq.f32.partialorder %v1121_v16, 8.507059e+37  ;;  %v1273_v13 = vld [vmem:[%s1924_s6 + $0x10] sm:$0xff]  ;;  %v1272_v16 = vld [vmem:[%s1924_s6 + $0x8] sm:$0xff] }
0x16fa   :  { %v1484_v30 = vpop.eup %1483 }
0x16fb   :  { %v1113_v7 = vmul.f32 %v1484_v30, %v1111_v24  ;;  %vm1118_vm10 = vweird.f32 %v1484_v30 }
0x16fc   :  { %vm1119_vm12 = vmor %vm1117_vm11, %vm1118_vm10 }
0x16fd   :  { %v1114_v11 = vsub.f32 1.0, %v1113_v7 }
0x16ff   :  { %v1115_v12 = vmul.f32 %v1484_v30, %v1114_v11 }
0x1701   :  { %v1116_v14 = vadd.f32 %v1484_v30, %v1115_v12 }
0x1703   :  { %v1120_v15 = vsel %vm1119_vm12, %v1484_v30, %v1116_v14  ;;  %v1274_v14 = vld [vmem:[%s1924_s6 + $0x18] sm:$0xff] }
0x1704   :  { %v1125_v2 = vsel %vm1122_vm13, %v1124_v61, %v1120_v15  ;;  %1296 = vmatpush.msrb.mxu0 %v1274_v14  ;;  %v1271_v15 = vld [vmem:[%s1924_s6] sm:$0xff] }
0x1705   :  { %v1128_v20 = vmul.f32 %v1125_v2, %v1075_v57 }
0x1706   :  { %1297 = vmatpush.msrb.mxu0 %v1273_v13 }
0x1708   :  { %1298 = vmatpush.msrb.mxu0 %v1272_v16 }
0x170a   :  { %1299 = vmatpush.msrb.mxu0 %v1271_v15 }
0x1762   :  { %v1131_v17 = vpop.permute.xlu1 %1130 }
0x1763   :  { %v1133_v18 = vmul.f32 %v1131_v17, %v1125_v2 }
0x1765   :  { %1135 = vrot.lane.b32.xlu2 %v1133_v18, %s1559_s4  ;;  %v1374_v18 = vld [vmem:[%s1925_s7] ss:$0 sm:$0xff] }
0x17bf   :  { %v1136_v8 = vpop.permute.xlu2 %1135 }
0x17c0   :  { %v1138_v9 = vadd.f32 %v1136_v8, %v1128_v20 }
0x17c2   :  { %1485 = vtanh.f32 %v1138_v9 }
0x17c8   :  { %v1486_v21 = vpop.eup %1485 }
0x17c9   :  { %1141 = vrot.lane.b32.xlu0 %v1486_v21, %s1558_s1 }
0x183b   :  { %v1142_v22 = vpop.permute.xlu0 %1141 }
0x183c   :  { %v1144_v10 = vmul.f32 %v1142_v22, %v1125_v2 }
0x183e   :  { %1146 = vrot.lane.b32.xlu1 %v1144_v10, %s1559_s4 }
0x18b0   :  { %v1147_v31 = vpop.permute.xlu1 %1146 }
0x18b1   :  { %1360 = vmatmul.msk.f32.vlgmr.msrb.gmra.mxu2 %vm130_vm6, %v1147_v31 }
0x1934   :  { %v1167_v33 = vpop.f32.mrf.mxu2 }
0x1935   :  { %v1170_v34 = vadd.f32 %v1167_v33, %v720_v32 }
0x1937   :  { %1487 = vtanh.f32 %v1170_v34  ;;  %v1361_v37 = vmul.f32 -1.442695, %v1170_v34 }
0x1939   :  { %1489 = vpow2.f32 %v1361_v37 }
0x193d   :  { %v1488_v35 = vpop.eup %1487 }
0x193e   :  { %1193 = vrot.lane.b32.xlu2 %v1488_v35, %s1558_s1 }
0x193f   :  { %v1490_v36 = vpop.eup %1489 }
0x1940   :  { %v1174_v38 = vadd.f32 1.0, %v1490_v36 }
0x1942   :  { %1491 = vrcp.f32 %v1174_v38  ;;  %v1186_v42 = vand.u32 2147483648, %v1174_v38  ;;  %vm1180_vm15 = vweird.f32 %v1174_v38  ;;  %v1184_v63 = vand.u32 2147483647, %v1174_v38 }
0x1944   :  { %v1187_v43 = vor.u32 1.1754944e-38, %v1186_v42  ;;  %vm1185_vm2 = vcmp.eq.f32.partialorder %v1184_v63, 8.507059e+37 }
0x1948   :  { %v1492_v23 = vpop.eup %1491 }
0x1949   :  { %v1176_v39 = vmul.f32 %v1492_v23, %v1174_v38  ;;  %vm1181_vm14 = vweird.f32 %v1492_v23 }
0x194a   :  { %vm1182_vm0 = vmor %vm1180_vm15, %vm1181_vm14 }
0x194b   :  { %v1177_v40 = vsub.f32 1.0, %v1176_v39 }
0x194d   :  { %v1178_v27 = vmul.f32 %v1492_v23, %v1177_v40 }
0x194f   :  { %v1179_v41 = vadd.f32 %v1492_v23, %v1178_v27 }
0x1951   :  { %v1183_v29 = vsel %vm1182_vm0, %v1492_v23, %v1179_v41 }
0x1952   :  { %v1188_v62 = vsel %vm1185_vm2, %v1187_v43, %v1183_v29 }
0x1953   :  { %v1191_v46 = vmul.f32 %v1188_v62, %v1138_v9 }
0x1998   :  { %v1194_v44 = vpop.permute.xlu2 %1193 }
0x1999   :  { %v1196_v45 = vmul.f32 %v1194_v44, %v1188_v62 }
0x199b   :  { %1198 = vrot.lane.b32.xlu0 %v1196_v45, %s1559_s4 }
0x1a0d   :  { %v1199_v4 = vpop.permute.xlu0 %1198 }
0x1a0e   :  { %v1201_v47 = vadd.f32 %v1199_v4, %v1191_v46 }
0x1a10   :  { %1493 = vtanh.f32 %v1201_v47 }
0x1a16   :  { %v1494_v48 = vpop.eup %1493 }
0x1a17   :  { %1204 = vrot.lane.b32.xlu1 %v1494_v48, %s1558_s1 }
0x1a89   :  { %v1205_v49 = vpop.permute.xlu1 %1204 }
0x1a8a   :  { %v1207_v50 = vmul.f32 %v1205_v49, %v1188_v62 }
0x1a8c   :  { %1209 = vrot.lane.b32.xlu2 %v1207_v50, %s1559_s4 }
0x1ae6   :  { %v1210_v51 = vpop.permute.xlu2 %1209 }
0x1ae7   :  { %1362 = vmatmul.msk.f32.vlgmr.msrb.gmra.mxu3 %vm130_vm6, %v1210_v51 }
0x1b6a   :  { %v1230_v53 = vpop.f32.mrf.mxu3 }
0x1b6b   :  { %v1233_v54 = vadd.f32 %v1230_v53, %v789_v52 }
0x1b6d   :  { %1495 = vtanh.f32 %v1233_v54  ;;  %v1363_v56 = vmul.f32 -1.442695, %v1233_v54 }
0x1b6f   :  { %1497 = vpow2.f32 %v1363_v56 }
0x1b73   :  { %v1496_v55 = vpop.eup %1495 }
0x1b74   :  { %1256 = vrot.lane.b32.xlu0 %v1496_v55, %s1558_s1 }
0x1b75   :  { %v1498_v57 = vpop.eup %1497 }
0x1b76   :  { %v1237_v58 = vadd.f32 1.0, %v1498_v57 }
0x1b78   :  { %1499 = vrcp.f32 %v1237_v58  ;;  %v1249_v5 = vand.u32 2147483648, %v1237_v58  ;;  %vm1243_vm1 = vweird.f32 %v1237_v58  ;;  %v1247_v19 = vand.u32 2147483647, %v1237_v58 }
0x1b7a   :  { %v1250_v26 = vor.u32 1.1754944e-38, %v1249_v5  ;;  %vm1248_vm5 = vcmp.eq.f32.partialorder %v1247_v19, 8.507059e+37 }
0x1b7e   :  { %v1500_v59 = vpop.eup %1499 }
0x1b7f   :  { %v1239_v60 = vmul.f32 %v1500_v59, %v1237_v58  ;;  %vm1244_vm3 = vweird.f32 %v1500_v59 }
0x1b80   :  { %vm1245_vm4 = vmor %vm1243_vm1, %vm1244_vm3 }
0x1b81   :  { %v1240_v0 = vsub.f32 1.0, %v1239_v60 }
0x1b83   :  { %v1241_v1 = vmul.f32 %v1500_v59, %v1240_v0 }
0x1b85   :  { %v1242_v3 = vadd.f32 %v1500_v59, %v1241_v1 }
0x1b87   :  { %v1246_v25 = vsel %vm1245_vm4, %v1500_v59, %v1242_v3 }
0x1b88   :  { %v1251_v6 = vsel %vm1248_vm5, %v1250_v26, %v1246_v25 }
0x1b89   :  { %v1254_v30 = vmul.f32 %v1251_v6, %v1201_v47 }
0x1be6   :  { %v1257_v28 = vpop.permute.xlu0 %1256 }
0x1be7   :  { %v1259_v24 = vmul.f32 %v1257_v28, %v1251_v6 }
0x1be9   :  { %1261 = vrot.lane.b32.xlu1 %v1259_v24, %s1559_s4 }
0x1c5b   :  { %v1262_v7 = vpop.permute.xlu1 %1261 }
0x1c5c   :  { %v1264_v11 = vadd.f32 %v1262_v7, %v1254_v30 }
0x1c5e   :  { %1501 = vtanh.f32 %v1264_v11 }
0x1c64   :  { %v1502_v12 = vpop.eup %1501 }
0x1c65   :  { %1267 = vrot.lane.b32.xlu2 %v1502_v12, %s1558_s1 }
0x1cbf   :  { %v1268_v61 = vpop.permute.xlu2 %1267 }
0x1cc0   :  { %v1270_v17 = vmul.f32 %v1268_v61, %v1251_v6 }
0x1cc2   :  { %1280 = vrot.lane.b32.xlu0 %v1270_v17, %s1559_s4 }
0x1d34   :  { %v1281_v2 = vpop.permute.xlu0 %1280 }
0x1d35   :  { %1364 = vmatmul.msk.f32.vlgmr.msrb.gmra.mxu0 %vm130_vm6, %v1281_v2 }
0x1db2   :  { %v1301_v20 = vpop.f32.mrf.mxu0 }
0x1db3   :  { %v1302_v8 = vadd.f32 %v1374_v18, %v1301_v20 }
0x1db5   :  { %1305 = vst.msk [vmem:[#allocation5] sm:$0x3] %vm1304_vm7, %v1302_v8 }
0x1db6   :  { %1316 = dma.vmem_to_hbm [thread:$0]  %s1312_s2, 32, %s1314_s17, [#allocation4]  }
0x1db7   :  { %1553 = dma.done.wait [#allocation4], 32  }
0x1db8   :  { %1554 = vsyncadd [#allocation4], 4294967264 }
0x1db9   :  { %1321 = vsyncpa [#allocation3], 1 }
0x1dba   :  { %1322 = vsyncpa [#allocation4], 1 }

</bundles_post_ra>
